<compile_context>
chip_gen: v7x
topology: tpu7x:2x2x1
jax: 0.10.0
libtpu: 0.0.40
codegen_flags: <defaults>
</compile_context>

<pallas_src>
import functools

import numpy as np

import jax
import jax.numpy as jnp
from jax.experimental import pallas as pl
from jax.experimental.pallas import tpu as pltpu

NUM_CLASSES = 5
HEAD_LANES = 16          # classes padded to 16 lanes/pixel -> flattened logits stay lane-dense


# ----------------------------------------------------------------------------
# Compiler params (per-generation VMEM budget)
# ----------------------------------------------------------------------------
def _vmem_limit_bytes():
    # ~3/4 of physical VMEM, capped at 96 MiB:
    #   v5e/v6e (128 MiB) -> 96 MiB ; v7x (64 MiB) -> 48 MiB.
    try:
        cap = pltpu.get_tpu_info().vmem_capacity_bytes
    except Exception:
        cap = 64 * 1024 * 1024
    return int(min(96 * 1024 * 1024, cap * 3 // 4))


def _compiler_params():
    return pltpu.CompilerParams(
        dimension_semantics=("parallel",),
        vmem_limit_bytes=_vmem_limit_bytes(),
    )


# ----------------------------------------------------------------------------
# Weight / gather matrix builders (host/XLA side; all tiny)
# ----------------------------------------------------------------------------
def _row_gather_mats(k, h_out, hp, stride):
    """(k, h_out, hp) 0/1 matrices: row i of tap ki selects input row stride*i+ki."""
    g = np.zeros((k, h_out, hp), np.float32)
    for ki in range(k):
        for i in range(h_out):
            g[ki, i, stride * i + ki] = 1.0
    return jnp.asarray(g, jnp.bfloat16)


def _conv_col_mats(w_oihw, wp, w_out, stride):
    """Pack the (kj, cin)->(j, cout) action of a KxK conv into per-row-tap matrices.

    Returns (k, wp*Cin, w_out*Cout) f32 with
      M[ki, jin*Cin + ci, j*Cout + co] = w[co, ci, ki, jin - stride*j]   (when in range).
    """
    cout, cin, k, _ = w_oihw.shape
    mats = []
    for ki in range(k):
        m = None
        for kj in range(k):
            sel = np.zeros((wp, w_out), np.float32)
            for j in range(w_out):
                sel[stride * j + kj, j] = 1.0
            t = jnp.kron(jnp.asarray(sel), jnp.transpose(w_oihw[:, :, ki, kj]))
            m = t if m is None else m + t
        mats.append(m)
    return jnp.stack(mats)


def _per_pixel_matrix(w_oc, w_out):
    """(w_out*Cin, w_out*Cout) block-diagonal matrix applying a 1x1 conv per pixel."""
    return jnp.kron(jnp.eye(w_out, dtype=w_oc.dtype), jnp.transpose(w_oc))


def _upsample_cols_matrix(w_oc, w_in, w_out):
    """(w_in*Cin, w_out*Cout): 1x1 conv + nearest-neighbour column upsample (j <- j//2)."""
    sel = np.zeros((w_in, w_out), np.float32)
    for j in range(w_out):
        sel[j // 2, j] = 1.0
    return jnp.kron(jnp.asarray(sel), jnp.transpose(w_oc))


def _shifted_cols_matrix(w_oc, w_in, w_out, shift):
    """(w_in*Cin, w_out*Cout): 1x1 conv reading column j+shift of a zero-haloed row."""
    sel = np.zeros((w_in, w_out), np.float32)
    for j in range(w_out):
        sel[j + shift, j] = 1.0
    return jnp.kron(jnp.asarray(sel), jnp.transpose(w_oc))


def _row_upsample_matrix(h_in, h_out):
    r = np.zeros((h_out, h_in), np.float32)
    for i in range(h_out):
        r[i, i // 2] = 1.0
    return jnp.asarray(r, jnp.bfloat16)


def _tile_bias(b, w_out):
    return jnp.tile(b.astype(jnp.float32), w_out).reshape(1, -1)


# ----------------------------------------------------------------------------
# Kernel 1: 3x3 stride-2 conv (+ReLU) on a row-major zero-haloed image
# ----------------------------------------------------------------------------
def _conv_s2_kernel(x_ref, g_ref, m_ref, b_ref, o_ref, *, k, h_out, relu, interior):
    # Row taps + stride-2 row selection via a tiny 0/1 gather matmul (MXU);
    # column taps + channel contraction packed into one wide-K matmul per row tap.
    x = x_ref[...]
    acc = None
    for ki in range(k):
        rows = jnp.dot(g_ref[ki], x, preferred_element_type=jnp.float32)
        rows = rows.astype(jnp.bfloat16)          # exact: 0/1 gather of bf16 values
        part = jnp.dot(rows, m_ref[ki], preferred_element_type=jnp.float32)
        acc = part if acc is None else acc + part
    acc = acc + b_ref[...]
    if relu:
        acc = jnp.maximum(acc, 0.0)
    if interior is None:
        o_ref[...] = acc.astype(o_ref.dtype)
    else:
        # Write the output pre-padded (zero halo) for the next 3x3 conv so no
        # XLA pad/reshape runs between the pallas_calls.
        r0, c0 = interior
        o_ref[...] = jnp.zeros_like(o_ref)
        o_ref[r0:r0 + h_out, c0:c0 + acc.shape[1]] = acc.astype(o_ref.dtype)


def conv3x3_s2(x_rows, w_oihw, bias, *, relu, pad_output, out_dtype=jnp.bfloat16):
    """x_rows: (B, Hp, Wp*Cin) bf16, already zero-padded by 1 pixel on each side."""
    # TODO(synk): for large images add an output-row-tile grid axis with a
    # (k-1)-row halo; at these sizes whole-image blocks fit VMEM with huge margin.
    B, hp, kc = x_rows.shape
    cout, cin, k, _ = w_oihw.shape
    wp = kc // cin
    stride = 2
    h_out = (hp - k) // stride + 1
    w_out = (wp - k) // stride + 1
    n_out = w_out * cout

    g = _row_gather_mats(k, h_out, hp, stride)
    m = _conv_col_mats(w_oihw, wp, w_out, stride).astype(jnp.bfloat16)
    bflat = _tile_bias(bias, w_out)

    if pad_output:
        rows_o, cols_o, interior = h_out + 2, (w_out + 2) * cout, (1, cout)
    else:
        rows_o, cols_o, interior = h_out, n_out, None

    return pl.pallas_call(
        functools.partial(_conv_s2_kernel, k=k, h_out=h_out, relu=relu, interior=interior),
        out_shape=jax.ShapeDtypeStruct((B, rows_o, cols_o), out_dtype),
        grid=(B,),
        in_specs=[
            pl.BlockSpec((None, hp, kc), lambda b: (b, 0, 0)),
            pl.BlockSpec((k, h_out, hp), lambda b: (0, 0, 0)),
            pl.BlockSpec((k, wp * cin, n_out), lambda b: (0, 0, 0)),
            pl.BlockSpec((1, n_out), lambda b: (0, 0)),
        ],
        out_specs=pl.BlockSpec((None, rows_o, cols_o), lambda b: (b, 0, 0)),
        compiler_params=_compiler_params(),
    )(x_rows, g, m, bflat)


# ----------------------------------------------------------------------------
# Kernel 2: FPN-lite decoder (lateral(f2) -> 2x upsample -> + lateral(f1))
# ----------------------------------------------------------------------------
def _fpn_decoder_kernel(f1_ref, f2_ref, r_ref, m1_ref, m2_ref, b_ref, o_ref, *, h2, cd):
    # Column upsample is folded into m2; row upsample is a 0/1 gather matmul.
    # The upsampled lateral never touches HBM; the FPN add is in f32.
    lat1 = jnp.dot(f1_ref[1:1 + h2, :], m1_ref[...], preferred_element_type=jnp.float32)
    f2u = jnp.dot(r_ref[...], f2_ref[...], preferred_element_type=jnp.float32)
    f2u = f2u.astype(jnp.bfloat16)                # exact row duplication
    lat2 = jnp.dot(f2u, m2_ref[...], preferred_element_type=jnp.float32)
    fused = lat1 + lat2 + b_ref[...]
    # Zero-haloed output layout for the fuse conv.
    o_ref[...] = jnp.zeros_like(o_ref)
    o_ref[1:1 + h2, cd:cd + fused.shape[1]] = fused.astype(o_ref.dtype)


def fpn_decode(f1p, f2, lat1_w, lat1_b, lat2_w, lat2_b, *, out_dtype=jnp.bfloat16):
    B, hp1, kc1 = f1p.shape
    _, h4, kc2 = f2.shape
    cd, c1 = lat1_w.shape
    c2 = lat2_w.shape[1]
    wp1 = kc1 // c1
    w2, h2 = wp1 - 2, hp1 - 2
    w4 = kc2 // c2
    n_out = w2 * cd

    m1 = _shifted_cols_matrix(lat1_w, wp1, w2, shift=1).astype(jnp.bfloat16)   # reads haloed f1
    m2 = _upsample_cols_matrix(lat2_w, w4, w2).astype(jnp.bfloat16)
    r = _row_upsample_matrix(h4, h2)
    bflat = _tile_bias(lat1_b + lat2_b, w2)

    rows_o, cols_o = h2 + 2, (w2 + 2) * cd
    return pl.pallas_call(
        functools.partial(_fpn_decoder_kernel, h2=h2, cd=cd),
        out_shape=jax.ShapeDtypeStruct((B, rows_o, cols_o), out_dtype),
        grid=(B,),
        in_specs=[
            pl.BlockSpec((None, hp1, kc1), lambda b: (b, 0, 0)),
            pl.BlockSpec((None, h4, kc2), lambda b: (b, 0, 0)),
            pl.BlockSpec((h2, h4), lambda b: (0, 0)),
            pl.BlockSpec((wp1 * c1, n_out), lambda b: (0, 0)),
            pl.BlockSpec((w4 * c2, n_out), lambda b: (0, 0)),
            pl.BlockSpec((1, n_out), lambda b: (0, 0)),
        ],
        out_specs=pl.BlockSpec((None, rows_o, cols_o), lambda b: (b, 0, 0)),
        compiler_params=_compiler_params(),
    )(f1p, f2, r, m1, m2, bflat)


# ----------------------------------------------------------------------------
# Kernel 3: 3x3 stride-1 fuse conv (+ReLU) with the 1x1 prediction head fused in
# ----------------------------------------------------------------------------
def _fuse_head_kernel(x_ref, m_ref, b_ref, hd_ref, hb_ref, o_ref, *, k, h_out, relu):
    acc = None
    for ki in range(k):
        part = jnp.dot(x_ref[ki:ki + h_out, :], m_ref[ki],
                       preferred_element_type=jnp.float32)
        acc = part if acc is None else acc + part
    acc = acc + b_ref[...]
    if relu:
        acc = jnp.maximum(acc, 0.0)
    # 1x1 head on the VMEM-resident decoded tile; only lane-dense logits hit HBM.
    logits = jnp.dot(acc.astype(jnp.bfloat16), hd_ref[...],
                     preferred_element_type=jnp.float32) + hb_ref[...]
    o_ref[...] = logits.astype(o_ref.dtype)


def fuse_conv_head(xp_rows, fuse_w, fuse_b, head_w, head_b, *, head_lanes=HEAD_LANES):
    B, hp, kc = xp_rows.shape
    cout, cin, k, _ = fuse_w.shape
    wp = kc // cin
    h_out = hp - k + 1
    w_out = wp - k + 1
    n_mid = w_out * cout
    nc = head_w.shape[0]

    m = _conv_col_mats(fuse_w, wp, w_out, stride=1).astype(jnp.bfloat16)
    bflat = _tile_bias(fuse_b, w_out)
    head_w_pad = jnp.zeros((head_lanes, cout), head_w.dtype).at[:nc].set(head_w)
    hd = _per_pixel_matrix(head_w_pad, w_out).astype(jnp.bfloat16)      # (n_mid, w_out*head_lanes)
    head_b_pad = jnp.zeros((head_lanes,), jnp.float32).at[:nc].set(head_b)
    hbflat = _tile_bias(head_b_pad, w_out)
    n_out = w_out * head_lanes

    return pl.pallas_call(
        functools.partial(_fuse_head_kernel, k=k, h_out=h_out, relu=True),
        out_shape=jax.ShapeDtypeStruct((B, h_out, n_out), jnp.float32),
        grid=(B,),
        in_specs=[
            pl.BlockSpec((None, hp, kc), lambda b: (b, 0, 0)),
            pl.BlockSpec((k, wp * cin, n_mid), lambda b: (0, 0, 0)),
            pl.BlockSpec((1, n_mid), lambda b: (0, 0)),
            pl.BlockSpec((n_mid, n_out), lambda b: (0, 0)),
            pl.BlockSpec((1, n_out), lambda b: (0, 0)),
        ],
        out_specs=pl.BlockSpec((None, h_out, n_out), lambda b: (b, 0, 0)),
        compiler_params=_compiler_params(),
    )(xp_rows, m, bflat, hd, hbflat)


# ----------------------------------------------------------------------------
# Parameters (deterministic init)
# ----------------------------------------------------------------------------
def init_params(key):
    ks = jax.random.split(key, 6)

    def w(k, shape, fan_in):
        return jax.random.normal(k, shape, jnp.float32) * (1.0 / jnp.sqrt(fan_in))

    return {
        # encoder
        "enc1_w": w(ks[0], (16, 4, 3, 3), 4 * 9),
        "enc1_b": jnp.zeros((16,), jnp.float32),
        "enc2_w": w(ks[1], (32, 16, 3, 3), 16 * 9),
        "enc2_b": jnp.zeros((32,), jnp.float32),
        # decoder (FPN-lite, 32 channels)
        "lat1_w": w(ks[2], (32, 16), 16),
        "lat1_b": jnp.zeros((32,), jnp.float32),
        "lat2_w": w(ks[3], (32, 32), 32),
        "lat2_b": jnp.zeros((32,), jnp.float32),
        "fuse_w": w(ks[4], (32, 32, 3, 3), 32 * 9),
        "fuse_b": jnp.zeros((32,), jnp.float32),
        # prediction head
        "head_w": w(ks[5], (NUM_CLASSES, 32), 32),
        "head_b": jnp.zeros((NUM_CLASSES,), jnp.float32),
    }


# ----------------------------------------------------------------------------
# ModelBase.forward equivalent
# ----------------------------------------------------------------------------
def model_forward(params, images_nchw, targets=None):
    """images: NCHW float32 -> {"logits": NCHW logits at stride 2}."""
    # TODO(synk): targets/loss path of the prediction head is not specified; logits only.
    B, cin, H, W = images_nchw.shape
    assert H % 4 == 0 and W % 4 == 0, "spatial dims must be multiples of 4"

    # Prologue (only input-side XLA layout op): NCHW -> zero-haloed row-major
    # (B, H+2, (W+2)*Cin) bf16.  Every layer below consumes/produces this layout.
    x = jnp.transpose(images_nchw, (0, 2, 3, 1))
    x = jnp.pad(x, ((0, 0), (1, 1), (1, 1), (0, 0)))
    x_rows = x.reshape(B, H + 2, (W + 2) * cin).astype(jnp.bfloat16)

    # --- feature_extractor: two 3x3 / stride-2 / ReLU conv stages -------------
    f1p = conv3x3_s2(x_rows, params["enc1_w"], params["enc1_b"],
                     relu=True, pad_output=True)        # (B, H/2+2, (W/2+2)*16) bf16, zero halo
    f2 = conv3x3_s2(f1p, params["enc2_w"], params["enc2_b"],
                    relu=True, pad_output=False)        # (B, H/4, W/4*32) bf16, lane-dense

    # --- feature_decoder: FPN-lite (laterals + fused 2x nearest upsample + add)
    fusedp = fpn_decode(f1p, f2,
                        params["lat1_w"], params["lat1_b"],
                        params["lat2_w"], params["lat2_b"])   # (B, H/2+2, (W/2+2)*32) bf16

    # --- fuse conv + prediction_head (decoded features never hit HBM) ---------
    logits_rows = fuse_conv_head(fusedp, params["fuse_w"], params["fuse_b"],
                                 params["head_w"], params["head_b"])  # (B, H/2, W/2*16) f32

    H2, W2 = H // 2, W // 2
    logits = logits_rows.reshape(B, H2, W2, HEAD_LANES)[..., :NUM_CLASSES]
    return {"logits": jnp.transpose(logits, (0, 3, 1, 2))}


# ----------------------------------------------------------------------------
# Pure-JAX f32 reference (numerical sanity check)
# ----------------------------------------------------------------------------
def _reference_forward(params, images_nchw):
    x = jnp.transpose(images_nchw, (0, 2, 3, 1))
    dn = ("NHWC", "OIHW", "NHWC")

    def conv(x, w, b, stride):
        y = jax.lax.conv_general_dilated(x, w, (stride, stride), ((1, 1), (1, 1)),
                                         dimension_numbers=dn)
        return y + b.reshape(1, 1, 1, -1)

    f1 = jax.nn.relu(conv(x, params["enc1_w"], params["enc1_b"], 2))
    f2 = jax.nn.relu(conv(f1, params["enc2_w"], params["enc2_b"], 2))
    p1 = jnp.einsum("bhwc,oc->bhwo", f1, params["lat1_w"]) + params["lat1_b"]
    p2 = jnp.einsum("bhwc,oc->bhwo", f2, params["lat2_w"]) + params["lat2_b"]
    fused = p1 + jnp.repeat(jnp.repeat(p2, 2, axis=1), 2, axis=2)
    dec = jax.nn.relu(conv(fused, params["fuse_w"], params["fuse_b"], 1))
    logits = jnp.einsum("bhwc,oc->bhwo", dec, params["head_w"]) + params["head_b"]
    return jnp.transpose(logits, (0, 3, 1, 2))


if __name__ == "__main__":
    key = jax.random.PRNGKey(0)
    k_img, k_param = jax.random.split(key)
    images = jax.random.normal(k_img, (2, 4, 16, 16), jnp.float32)  # NCHW like PyTorch
    params = init_params(k_param)

    out = jax.jit(model_forward)(params, images)
    logits = jax.block_until_ready(out["logits"])

    assert logits.shape == (2, NUM_CLASSES, 8, 8), logits.shape
    assert bool(jnp.all(jnp.isfinite(logits)))

    ref = _reference_forward(params, images)
    max_err = float(jnp.max(jnp.abs(logits.astype(jnp.float32) - ref)))
    assert max_err < 0.25, f"max abs err vs f32 reference too large: {max_err}"

    print("KERNEL_OK")
</pallas_src>

<mosaic_0001>
module attributes {stable_mosaic.version = 11 : i64} {
  func.func @_conv_s2_kernel(%arg0: i32, %arg1: memref<1x18x72xbf16, #tpu.memory_space<vmem>>, %arg2: memref<3x8x18xbf16, #tpu.memory_space<vmem>>, %arg3: memref<3x72x128xbf16, #tpu.memory_space<vmem>>, %arg4: memref<1x128xf32, #tpu.memory_space<vmem>>, %arg5: memref<1x10x160xbf16, #tpu.memory_space<vmem>>) attributes {dimension_semantics = [#tpu.dimension_semantics<parallel>], iteration_bounds = array<i64: 2>, scalar_prefetch = 0 : i64, scratch_operands = 0 : i64, tpu.core_type = #tpu.core_type<tc>, window_params = [{transform_indices = @transform_0, window_bounds = array<i64: 1, 18, 72>}, {pipeline_mode = #tpu.pipeline_mode<synchronous>, transform_indices = @transform_1, window_bounds = array<i64: 3, 8, 18>}, {pipeline_mode = #tpu.pipeline_mode<synchronous>, transform_indices = @transform_2, window_bounds = array<i64: 3, 72, 128>}, {pipeline_mode = #tpu.pipeline_mode<synchronous>, transform_indices = @transform_3, window_bounds = array<i64: 1, 128>}, {transform_indices = @transform_4, window_bounds = array<i64: 1, 10, 160>}]} {
    %c0 = arith.constant 0 : index
    %c0_0 = arith.constant 0 : index
    %c0_1 = arith.constant 0 : index
    %0 = vector.load %arg1[%c0, %c0_0, %c0_1] : memref<1x18x72xbf16, #tpu.memory_space<vmem>>, vector<1x18x72xbf16>
    %1 = vector.shape_cast %0 : vector<1x18x72xbf16> to vector<18x72xbf16>
    %c0_2 = arith.constant 0 : index
    %c0_3 = arith.constant 0 : index
    %c0_4 = arith.constant 0 : index
    %2 = vector.load %arg2[%c0_2, %c0_3, %c0_4] : memref<3x8x18xbf16, #tpu.memory_space<vmem>>, vector<1x8x18xbf16>
    %3 = vector.shape_cast %2 : vector<1x8x18xbf16> to vector<8x18xbf16>
    %cst = arith.constant dense<0.000000e+00> : vector<8x72xf32>
    %4 = tpu.matmul %3, %1, %cst {dimension_numbers = #tpu.dot_dimension_numbers<[1], [0], [0], [1], [0, 0, 1, 1], [], []>} : vector<8x18xbf16>, vector<18x72xbf16>, vector<8x72xf32> -> vector<8x72xf32>
    %5 = arith.truncf %4 : vector<8x72xf32> to vector<8x72xbf16>
    %c0_5 = arith.constant 0 : index
    %c0_6 = arith.constant 0 : index
    %c0_7 = arith.constant 0 : index
    %6 = vector.load %arg3[%c0_5, %c0_6, %c0_7] : memref<3x72x128xbf16, #tpu.memory_space<vmem>>, vector<1x72x128xbf16>
    %7 = vector.shape_cast %6 : vector<1x72x128xbf16> to vector<72x128xbf16>
    %cst_8 = arith.constant dense<0.000000e+00> : vector<8x128xf32>
    %8 = tpu.matmul %5, %7, %cst_8 {dimension_numbers = #tpu.dot_dimension_numbers<[1], [0], [0], [1], [0, 0, 1, 1], [], []>} : vector<8x72xbf16>, vector<72x128xbf16>, vector<8x128xf32> -> vector<8x128xf32>
    %c1 = arith.constant 1 : index
    %c0_9 = arith.constant 0 : index
    %c0_10 = arith.constant 0 : index
    %9 = vector.load %arg2[%c1, %c0_9, %c0_10] : memref<3x8x18xbf16, #tpu.memory_space<vmem>>, vector<1x8x18xbf16>
    %10 = vector.shape_cast %9 : vector<1x8x18xbf16> to vector<8x18xbf16>
    %cst_11 = arith.constant dense<0.000000e+00> : vector<8x72xf32>
    %11 = tpu.matmul %10, %1, %cst_11 {dimension_numbers = #tpu.dot_dimension_numbers<[1], [0], [0], [1], [0, 0, 1, 1], [], []>} : vector<8x18xbf16>, vector<18x72xbf16>, vector<8x72xf32> -> vector<8x72xf32>
    %12 = arith.truncf %11 : vector<8x72xf32> to vector<8x72xbf16>
    %c1_12 = arith.constant 1 : index
    %c0_13 = arith.constant 0 : index
    %c0_14 = arith.constant 0 : index
    %13 = vector.load %arg3[%c1_12, %c0_13, %c0_14] : memref<3x72x128xbf16, #tpu.memory_space<vmem>>, vector<1x72x128xbf16>
    %14 = vector.shape_cast %13 : vector<1x72x128xbf16> to vector<72x128xbf16>
    %cst_15 = arith.constant dense<0.000000e+00> : vector<8x128xf32>
    %15 = tpu.matmul %12, %14, %cst_15 {dimension_numbers = #tpu.dot_dimension_numbers<[1], [0], [0], [1], [0, 0, 1, 1], [], []>} : vector<8x72xbf16>, vector<72x128xbf16>, vector<8x128xf32> -> vector<8x128xf32>
    %16 = arith.addf %8, %15 : vector<8x128xf32>
    %c2 = arith.constant 2 : index
    %c0_16 = arith.constant 0 : index
    %c0_17 = arith.constant 0 : index
    %17 = vector.load %arg2[%c2, %c0_16, %c0_17] : memref<3x8x18xbf16, #tpu.memory_space<vmem>>, vector<1x8x18xbf16>
    %18 = vector.shape_cast %17 : vector<1x8x18xbf16> to vector<8x18xbf16>
    %cst_18 = arith.constant dense<0.000000e+00> : vector<8x72xf32>
    %19 = tpu.matmul %18, %1, %cst_18 {dimension_numbers = #tpu.dot_dimension_numbers<[1], [0], [0], [1], [0, 0, 1, 1], [], []>} : vector<8x18xbf16>, vector<18x72xbf16>, vector<8x72xf32> -> vector<8x72xf32>
    %20 = arith.truncf %19 : vector<8x72xf32> to vector<8x72xbf16>
    %c2_19 = arith.constant 2 : index
    %c0_20 = arith.constant 0 : index
    %c0_21 = arith.constant 0 : index
    %21 = vector.load %arg3[%c2_19, %c0_20, %c0_21] : memref<3x72x128xbf16, #tpu.memory_space<vmem>>, vector<1x72x128xbf16>
    %22 = vector.shape_cast %21 : vector<1x72x128xbf16> to vector<72x128xbf16>
    %cst_22 = arith.constant dense<0.000000e+00> : vector<8x128xf32>
    %23 = tpu.matmul %20, %22, %cst_22 {dimension_numbers = #tpu.dot_dimension_numbers<[1], [0], [0], [1], [0, 0, 1, 1], [], []>} : vector<8x72xbf16>, vector<72x128xbf16>, vector<8x128xf32> -> vector<8x128xf32>
    %24 = arith.addf %16, %23 : vector<8x128xf32>
    %c0_23 = arith.constant 0 : index
    %c0_24 = arith.constant 0 : index
    %25 = vector.load %arg4[%c0_23, %c0_24] : memref<1x128xf32, #tpu.memory_space<vmem>>, vector<1x128xf32>
    %26 = vector.broadcast %25 : vector<1x128xf32> to vector<8x128xf32>
    %27 = arith.addf %24, %26 : vector<8x128xf32>
    %cst_25 = arith.constant 0.000000e+00 : f32
    %28 = vector.broadcast %cst_25 : f32 to vector<8x128xf32>
    %29 = arith.maximumf %27, %28 : vector<8x128xf32>
    %cst_26 = arith.constant 0.000000e+00 : bf16
    %30 = vector.broadcast %cst_26 : bf16 to vector<10x160xbf16>
    %c0_27 = arith.constant 0 : index
    %c0_28 = arith.constant 0 : index
    %c0_29 = arith.constant 0 : index
    %31 = vector.load %arg5[%c0_27, %c0_28, %c0_29] : memref<1x10x160xbf16, #tpu.memory_space<vmem>>, vector<1x10x160xbf16>
    %32 = vector.shape_cast %31 : vector<1x10x160xbf16> to vector<10x160xbf16>
    %33 = vector.shape_cast %30 : vector<10x160xbf16> to vector<1x10x160xbf16>
    tpu.vector_store %arg5[%c0_27, %c0_28, %c0_29], %33 {strides = array<i32>} : memref<1x10x160xbf16, #tpu.memory_space<vmem>>, vector<1x10x160xbf16>,
    %34 = arith.truncf %29 : vector<8x128xf32> to vector<8x128xbf16>
    %c0_30 = arith.constant 0 : index
    %c1_31 = arith.constant 1 : index
    %c16 = arith.constant 16 : index
    %35 = vector.load %arg5[%c0_30, %c1_31, %c16] : memref<1x10x160xbf16, #tpu.memory_space<vmem>>, vector<1x8x128xbf16>
    %36 = vector.shape_cast %35 : vector<1x8x128xbf16> to vector<8x128xbf16>
    %37 = vector.shape_cast %34 : vector<8x128xbf16> to vector<1x8x128xbf16>
    tpu.vector_store %arg5[%c0_30, %c1_31, %c16], %37 {strides = array<i32>} : memref<1x10x160xbf16, #tpu.memory_space<vmem>>, vector<1x8x128xbf16>,
    return
  }
  func.func @transform_0(%arg0: i32) -> (i32, i32, i32) {
    %c0_i32 = arith.constant 0 : i32
    %c0_i32_0 = arith.constant 0 : i32
    %c0_i32_1 = arith.constant 0 : i32
    return %arg0, %c0_i32, %c0_i32_0 : i32, i32, i32
  }
  func.func @transform_1(%arg0: i32) -> (i32, i32, i32) {
    %c0_i32 = arith.constant 0 : i32
    %c0_i32_0 = arith.constant 0 : i32
    %c0_i32_1 = arith.constant 0 : i32
    %c0_i32_2 = arith.constant 0 : i32
    return %c0_i32, %c0_i32_0, %c0_i32_1 : i32, i32, i32
  }
  func.func @transform_2(%arg0: i32) -> (i32, i32, i32) {
    %c0_i32 = arith.constant 0 : i32
    %c0_i32_0 = arith.constant 0 : i32
    %c0_i32_1 = arith.constant 0 : i32
    %c0_i32_2 = arith.constant 0 : i32
    return %c0_i32, %c0_i32_0, %c0_i32_1 : i32, i32, i32
  }
  func.func @transform_3(%arg0: i32) -> (i32, i32) {
    %c0_i32 = arith.constant 0 : i32
    %c0_i32_0 = arith.constant 0 : i32
    %c0_i32_1 = arith.constant 0 : i32
    return %c0_i32, %c0_i32_0 : i32, i32
  }
  func.func @transform_4(%arg0: i32) -> (i32, i32, i32) {
    %c0_i32 = arith.constant 0 : i32
    %c0_i32_0 = arith.constant 0 : i32
    %c0_i32_1 = arith.constant 0 : i32
    return %arg0, %c0_i32, %c0_i32_0 : i32, i32, i32
  }
}

module attributes {stable_mosaic.version = 11 : i64} {
  func.func @_conv_s2_kernel(%arg0: i32, %arg1: memref<1x10x160xbf16, #tpu.memory_space<vmem>>, %arg2: memref<3x4x10xbf16, #tpu.memory_space<vmem>>, %arg3: memref<3x160x128xbf16, #tpu.memory_space<vmem>>, %arg4: memref<1x128xf32, #tpu.memory_space<vmem>>, %arg5: memref<1x4x128xbf16, #tpu.memory_space<vmem>>) attributes {dimension_semantics = [#tpu.dimension_semantics<parallel>], iteration_bounds = array<i64: 2>, scalar_prefetch = 0 : i64, scratch_operands = 0 : i64, tpu.core_type = #tpu.core_type<tc>, window_params = [{transform_indices = @transform_0, window_bounds = array<i64: 1, 10, 160>}, {pipeline_mode = #tpu.pipeline_mode<synchronous>, transform_indices = @transform_1, window_bounds = array<i64: 3, 4, 10>}, {pipeline_mode = #tpu.pipeline_mode<synchronous>, transform_indices = @transform_2, window_bounds = array<i64: 3, 160, 128>}, {pipeline_mode = #tpu.pipeline_mode<synchronous>, transform_indices = @transform_3, window_bounds = array<i64: 1, 128>}, {transform_indices = @transform_4, window_bounds = array<i64: 1, 4, 128>}]} {
    %c0 = arith.constant 0 : index
    %c0_0 = arith.constant 0 : index
    %c0_1 = arith.constant 0 : index
    %0 = vector.load %arg1[%c0, %c0_0, %c0_1] : memref<1x10x160xbf16, #tpu.memory_space<vmem>>, vector<1x10x160xbf16>
    %1 = vector.shape_cast %0 : vector<1x10x160xbf16> to vector<10x160xbf16>
    %c0_2 = arith.constant 0 : index
    %c0_3 = arith.constant 0 : index
    %c0_4 = arith.constant 0 : index
    %2 = vector.load %arg2[%c0_2, %c0_3, %c0_4] : memref<3x4x10xbf16, #tpu.memory_space<vmem>>, vector<1x4x10xbf16>
    %3 = vector.shape_cast %2 : vector<1x4x10xbf16> to vector<4x10xbf16>
    %cst = arith.constant dense<0.000000e+00> : vector<4x160xf32>
    %4 = tpu.matmul %3, %1, %cst {dimension_numbers = #tpu.dot_dimension_numbers<[1], [0], [0], [1], [0, 0, 1, 1], [], []>} : vector<4x10xbf16>, vector<10x160xbf16>, vector<4x160xf32> -> vector<4x160xf32>
    %5 = arith.truncf %4 : vector<4x160xf32> to vector<4x160xbf16>
    %c0_5 = arith.constant 0 : index
    %c0_6 = arith.constant 0 : index
    %c0_7 = arith.constant 0 : index
    %6 = vector.load %arg3[%c0_5, %c0_6, %c0_7] : memref<3x160x128xbf16, #tpu.memory_space<vmem>>, vector<1x160x128xbf16>
    %7 = vector.shape_cast %6 : vector<1x160x128xbf16> to vector<160x128xbf16>
    %cst_8 = arith.constant dense<0.000000e+00> : vector<4x128xf32>
    %8 = tpu.matmul %5, %7, %cst_8 {dimension_numbers = #tpu.dot_dimension_numbers<[1], [0], [0], [1], [0, 0, 1, 1], [], []>} : vector<4x160xbf16>, vector<160x128xbf16>, vector<4x128xf32> -> vector<4x128xf32>
    %c1 = arith.constant 1 : index
    %c0_9 = arith.constant 0 : index
    %c0_10 = arith.constant 0 : index
    %9 = vector.load %arg2[%c1, %c0_9, %c0_10] : memref<3x4x10xbf16, #tpu.memory_space<vmem>>, vector<1x4x10xbf16>
    %10 = vector.shape_cast %9 : vector<1x4x10xbf16> to vector<4x10xbf16>
    %cst_11 = arith.constant dense<0.000000e+00> : vector<4x160xf32>
    %11 = tpu.matmul %10, %1, %cst_11 {dimension_numbers = #tpu.dot_dimension_numbers<[1], [0], [0], [1], [0, 0, 1, 1], [], []>} : vector<4x10xbf16>, vector<10x160xbf16>, vector<4x160xf32> -> vector<4x160xf32>
    %12 = arith.truncf %11 : vector<4x160xf32> to vector<4x160xbf16>
    %c1_12 = arith.constant 1 : index
    %c0_13 = arith.constant 0 : index
    %c0_14 = arith.constant 0 : index
    %13 = vector.load %arg3[%c1_12, %c0_13, %c0_14] : memref<3x160x128xbf16, #tpu.memory_space<vmem>>, vector<1x160x128xbf16>
    %14 = vector.shape_cast %13 : vector<1x160x128xbf16> to vector<160x128xbf16>
    %cst_15 = arith.constant dense<0.000000e+00> : vector<4x128xf32>
    %15 = tpu.matmul %12, %14, %cst_15 {dimension_numbers = #tpu.dot_dimension_numbers<[1], [0], [0], [1], [0, 0, 1, 1], [], []>} : vector<4x160xbf16>, vector<160x128xbf16>, vector<4x128xf32> -> vector<4x128xf32>
    %16 = arith.addf %8, %15 : vector<4x128xf32>
    %c2 = arith.constant 2 : index
    %c0_16 = arith.constant 0 : index
    %c0_17 = arith.constant 0 : index
    %17 = vector.load %arg2[%c2, %c0_16, %c0_17] : memref<3x4x10xbf16, #tpu.memory_space<vmem>>, vector<1x4x10xbf16>
    %18 = vector.shape_cast %17 : vector<1x4x10xbf16> to vector<4x10xbf16>
    %cst_18 = arith.constant dense<0.000000e+00> : vector<4x160xf32>
    %19 = tpu.matmul %18, %1, %cst_18 {dimension_numbers = #tpu.dot_dimension_numbers<[1], [0], [0], [1], [0, 0, 1, 1], [], []>} : vector<4x10xbf16>, vector<10x160xbf16>, vector<4x160xf32> -> vector<4x160xf32>
    %20 = arith.truncf %19 : vector<4x160xf32> to vector<4x160xbf16>
    %c2_19 = arith.constant 2 : index
    %c0_20 = arith.constant 0 : index
    %c0_21 = arith.constant 0 : index
    %21 = vector.load %arg3[%c2_19, %c0_20, %c0_21] : memref<3x160x128xbf16, #tpu.memory_space<vmem>>, vector<1x160x128xbf16>
    %22 = vector.shape_cast %21 : vector<1x160x128xbf16> to vector<160x128xbf16>
    %cst_22 = arith.constant dense<0.000000e+00> : vector<4x128xf32>
    %23 = tpu.matmul %20, %22, %cst_22 {dimension_numbers = #tpu.dot_dimension_numbers<[1], [0], [0], [1], [0, 0, 1, 1], [], []>} : vector<4x160xbf16>, vector<160x128xbf16>, vector<4x128xf32> -> vector<4x128xf32>
    %24 = arith.addf %16, %23 : vector<4x128xf32>
    %c0_23 = arith.constant 0 : index
    %c0_24 = arith.constant 0 : index
    %25 = vector.load %arg4[%c0_23, %c0_24] : memref<1x128xf32, #tpu.memory_space<vmem>>, vector<1x128xf32>
    %26 = vector.broadcast %25 : vector<1x128xf32> to vector<4x128xf32>
    %27 = arith.addf %24, %26 : vector<4x128xf32>
    %cst_25 = arith.constant 0.000000e+00 : f32
    %28 = vector.broadcast %cst_25 : f32 to vector<4x128xf32>
    %29 = arith.maximumf %27, %28 : vector<4x128xf32>
    %30 = arith.truncf %29 : vector<4x128xf32> to vector<4x128xbf16>
    %c0_26 = arith.constant 0 : index
    %c0_27 = arith.constant 0 : index
    %c0_28 = arith.constant 0 : index
    %31 = vector.load %arg5[%c0_26, %c0_27, %c0_28] : memref<1x4x128xbf16, #tpu.memory_space<vmem>>, vector<1x4x128xbf16>
    %32 = vector.shape_cast %31 : vector<1x4x128xbf16> to vector<4x128xbf16>
    %33 = vector.shape_cast %30 : vector<4x128xbf16> to vector<1x4x128xbf16>
    tpu.vector_store %arg5[%c0_26, %c0_27, %c0_28], %33 {strides = array<i32>} : memref<1x4x128xbf16, #tpu.memory_space<vmem>>, vector<1x4x128xbf16>,
    return
  }
  func.func @transform_0(%arg0: i32) -> (i32, i32, i32) {
    %c0_i32 = arith.constant 0 : i32
    %c0_i32_0 = arith.constant 0 : i32
    %c0_i32_1 = arith.constant 0 : i32
    return %arg0, %c0_i32, %c0_i32_0 : i32, i32, i32
  }
  func.func @transform_1(%arg0: i32) -> (i32, i32, i32) {
    %c0_i32 = arith.constant 0 : i32
    %c0_i32_0 = arith.constant 0 : i32
    %c0_i32_1 = arith.constant 0 : i32
    %c0_i32_2 = arith.constant 0 : i32
    return %c0_i32, %c0_i32_0, %c0_i32_1 : i32, i32, i32
  }
  func.func @transform_2(%arg0: i32) -> (i32, i32, i32) {
    %c0_i32 = arith.constant 0 : i32
    %c0_i32_0 = arith.constant 0 : i32
    %c0_i32_1 = arith.constant 0 : i32
    %c0_i32_2 = arith.constant 0 : i32
    return %c0_i32, %c0_i32_0, %c0_i32_1 : i32, i32, i32
  }
  func.func @transform_3(%arg0: i32) -> (i32, i32) {
    %c0_i32 = arith.constant 0 : i32
    %c0_i32_0 = arith.constant 0 : i32
    %c0_i32_1 = arith.constant 0 : i32
    return %c0_i32, %c0_i32_0 : i32, i32
  }
  func.func @transform_4(%arg0: i32) -> (i32, i32, i32) {
    %c0_i32 = arith.constant 0 : i32
    %c0_i32_0 = arith.constant 0 : i32
    %c0_i32_1 = arith.constant 0 : i32
    return %arg0, %c0_i32, %c0_i32_0 : i32, i32, i32
  }
}

module attributes {stable_mosaic.version = 11 : i64} {
  func.func @_fpn_decoder_kernel(%arg0: i32, %arg1: memref<1x10x160xbf16, #tpu.memory_space<vmem>>, %arg2: memref<1x4x128xbf16, #tpu.memory_space<vmem>>, %arg3: memref<8x4xbf16, #tpu.memory_space<vmem>>, %arg4: memref<160x256xbf16, #tpu.memory_space<vmem>>, %arg5: memref<128x256xbf16, #tpu.memory_space<vmem>>, %arg6: memref<1x256xf32, #tpu.memory_space<vmem>>, %arg7: memref<1x10x320xbf16, #tpu.memory_space<vmem>>) attributes {dimension_semantics = [#tpu.dimension_semantics<parallel>], iteration_bounds = array<i64: 2>, scalar_prefetch = 0 : i64, scratch_operands = 0 : i64, tpu.core_type = #tpu.core_type<tc>, window_params = [{transform_indices = @transform_0, window_bounds = array<i64: 1, 10, 160>}, {transform_indices = @transform_1, window_bounds = array<i64: 1, 4, 128>}, {pipeline_mode = #tpu.pipeline_mode<synchronous>, transform_indices = @transform_2, window_bounds = array<i64: 8, 4>}, {pipeline_mode = #tpu.pipeline_mode<synchronous>, transform_indices = @transform_3, window_bounds = array<i64: 160, 256>}, {pipeline_mode = #tpu.pipeline_mode<synchronous>, transform_indices = @transform_4, window_bounds = array<i64: 128, 256>}, {pipeline_mode = #tpu.pipeline_mode<synchronous>, transform_indices = @transform_5, window_bounds = array<i64: 1, 256>}, {transform_indices = @transform_6, window_bounds = array<i64: 1, 10, 320>}]} {
    %c0 = arith.constant 0 : index
    %c1 = arith.constant 1 : index
    %c0_0 = arith.constant 0 : index
    %0 = vector.load %arg1[%c0, %c1, %c0_0] : memref<1x10x160xbf16, #tpu.memory_space<vmem>>, vector<1x8x160xbf16>
    %1 = vector.shape_cast %0 : vector<1x8x160xbf16> to vector<8x160xbf16>
    %c0_1 = arith.constant 0 : index
    %c0_2 = arith.constant 0 : index
    %2 = vector.load %arg4[%c0_1, %c0_2] : memref<160x256xbf16, #tpu.memory_space<vmem>>, vector<160x256xbf16>
    %cst = arith.constant dense<0.000000e+00> : vector<8x256xf32>
    %3 = tpu.matmul %1, %2, %cst {dimension_numbers = #tpu.dot_dimension_numbers<[1], [0], [0], [1], [0, 0, 1, 1], [], []>} : vector<8x160xbf16>, vector<160x256xbf16>, vector<8x256xf32> -> vector<8x256xf32>
    %c0_3 = arith.constant 0 : index
    %c0_4 = arith.constant 0 : index
    %4 = vector.load %arg3[%c0_3, %c0_4] : memref<8x4xbf16, #tpu.memory_space<vmem>>, vector<8x4xbf16>
    %c0_5 = arith.constant 0 : index
    %c0_6 = arith.constant 0 : index
    %c0_7 = arith.constant 0 : index
    %5 = vector.load %arg2[%c0_5, %c0_6, %c0_7] : memref<1x4x128xbf16, #tpu.memory_space<vmem>>, vector<1x4x128xbf16>
    %6 = vector.shape_cast %5 : vector<1x4x128xbf16> to vector<4x128xbf16>
    %cst_8 = arith.constant dense<0.000000e+00> : vector<8x128xf32>
    %7 = tpu.matmul %4, %6, %cst_8 {dimension_numbers = #tpu.dot_dimension_numbers<[1], [0], [0], [1], [0, 0, 1, 1], [], []>} : vector<8x4xbf16>, vector<4x128xbf16>, vector<8x128xf32> -> vector<8x128xf32>
    %8 = arith.truncf %7 : vector<8x128xf32> to vector<8x128xbf16>
    %c0_9 = arith.constant 0 : index
    %c0_10 = arith.constant 0 : index
    %9 = vector.load %arg5[%c0_9, %c0_10] : memref<128x256xbf16, #tpu.memory_space<vmem>>, vector<128x256xbf16>
    %cst_11 = arith.constant dense<0.000000e+00> : vector<8x256xf32>
    %10 = tpu.matmul %8, %9, %cst_11 {dimension_numbers = #tpu.dot_dimension_numbers<[1], [0], [0], [1], [0, 0, 1, 1], [], []>} : vector<8x128xbf16>, vector<128x256xbf16>, vector<8x256xf32> -> vector<8x256xf32>
    %11 = arith.addf %3, %10 : vector<8x256xf32>
    %c0_12 = arith.constant 0 : index
    %c0_13 = arith.constant 0 : index
    %12 = vector.load %arg6[%c0_12, %c0_13] : memref<1x256xf32, #tpu.memory_space<vmem>>, vector<1x256xf32>
    %13 = vector.broadcast %12 : vector<1x256xf32> to vector<8x256xf32>
    %14 = arith.addf %11, %13 : vector<8x256xf32>
    %cst_14 = arith.constant 0.000000e+00 : bf16
    %15 = vector.broadcast %cst_14 : bf16 to vector<10x320xbf16>
    %c0_15 = arith.constant 0 : index
    %c0_16 = arith.constant 0 : index
    %c0_17 = arith.constant 0 : index
    %16 = vector.load %arg7[%c0_15, %c0_16, %c0_17] : memref<1x10x320xbf16, #tpu.memory_space<vmem>>, vector<1x10x320xbf16>
    %17 = vector.shape_cast %16 : vector<1x10x320xbf16> to vector<10x320xbf16>
    %18 = vector.shape_cast %15 : vector<10x320xbf16> to vector<1x10x320xbf16>
    tpu.vector_store %arg7[%c0_15, %c0_16, %c0_17], %18 {strides = array<i32>} : memref<1x10x320xbf16, #tpu.memory_space<vmem>>, vector<1x10x320xbf16>,
    %19 = arith.truncf %14 : vector<8x256xf32> to vector<8x256xbf16>
    %c0_18 = arith.constant 0 : index
    %c1_19 = arith.constant 1 : index
    %c32 = arith.constant 32 : index
    %20 = vector.load %arg7[%c0_18, %c1_19, %c32] : memref<1x10x320xbf16, #tpu.memory_space<vmem>>, vector<1x8x256xbf16>
    %21 = vector.shape_cast %20 : vector<1x8x256xbf16> to vector<8x256xbf16>
    %22 = vector.shape_cast %19 : vector<8x256xbf16> to vector<1x8x256xbf16>
    tpu.vector_store %arg7[%c0_18, %c1_19, %c32], %22 {strides = array<i32>} : memref<1x10x320xbf16, #tpu.memory_space<vmem>>, vector<1x8x256xbf16>,
    return
  }
  func.func @transform_0(%arg0: i32) -> (i32, i32, i32) {
    %c0_i32 = arith.constant 0 : i32
    %c0_i32_0 = arith.constant 0 : i32
    %c0_i32_1 = arith.constant 0 : i32
    return %arg0, %c0_i32, %c0_i32_0 : i32, i32, i32
  }
  func.func @transform_1(%arg0: i32) -> (i32, i32, i32) {
    %c0_i32 = arith.constant 0 : i32
    %c0_i32_0 = arith.constant 0 : i32
    %c0_i32_1 = arith.constant 0 : i32
    return %arg0, %c0_i32, %c0_i32_0 : i32, i32, i32
  }
  func.func @transform_2(%arg0: i32) -> (i32, i32) {
    %c0_i32 = arith.constant 0 : i32
    %c0_i32_0 = arith.constant 0 : i32
    %c0_i32_1 = arith.constant 0 : i32
    return %c0_i32, %c0_i32_0 : i32, i32
  }
  func.func @transform_3(%arg0: i32) -> (i32, i32) {
    %c0_i32 = arith.constant 0 : i32
    %c0_i32_0 = arith.constant 0 : i32
    %c0_i32_1 = arith.constant 0 : i32
    return %c0_i32, %c0_i32_0 : i32, i32
  }
  func.func @transform_4(%arg0: i32) -> (i32, i32) {
    %c0_i32 = arith.constant 0 : i32
    %c0_i32_0 = arith.constant 0 : i32
    %c0_i32_1 = arith.constant 0 : i32
    return %c0_i32, %c0_i32_0 : i32, i32
  }
  func.func @transform_5(%arg0: i32) -> (i32, i32) {
    %c0_i32 = arith.constant 0 : i32
    %c0_i32_0 = arith.constant 0 : i32
    %c0_i32_1 = arith.constant 0 : i32
    return %c0_i32, %c0_i32_0 : i32, i32
  }
  func.func @transform_6(%arg0: i32) -> (i32, i32, i32) {
    %c0_i32 = arith.constant 0 : i32
    %c0_i32_0 = arith.constant 0 : i32
    %c0_i32_1 = arith.constant 0 : i32
    return %arg0, %c0_i32, %c0_i32_0 : i32, i32, i32
  }
}

module attributes {stable_mosaic.version = 11 : i64} {
  func.func @_fuse_head_kernel(%arg0: i32, %arg1: memref<1x10x320xbf16, #tpu.memory_space<vmem>>, %arg2: memref<3x320x256xbf16, #tpu.memory_space<vmem>>, %arg3: memref<1x256xf32, #tpu.memory_space<vmem>>, %arg4: memref<256x128xbf16, #tpu.memory_space<vmem>>, %arg5: memref<1x128xf32, #tpu.memory_space<vmem>>, %arg6: memref<1x8x128xf32, #tpu.memory_space<vmem>>) attributes {dimension_semantics = [#tpu.dimension_semantics<parallel>], iteration_bounds = array<i64: 2>, scalar_prefetch = 0 : i64, scratch_operands = 0 : i64, tpu.core_type = #tpu.core_type<tc>, window_params = [{transform_indices = @transform_0, window_bounds = array<i64: 1, 10, 320>}, {pipeline_mode = #tpu.pipeline_mode<synchronous>, transform_indices = @transform_1, window_bounds = array<i64: 3, 320, 256>}, {pipeline_mode = #tpu.pipeline_mode<synchronous>, transform_indices = @transform_2, window_bounds = array<i64: 1, 256>}, {pipeline_mode = #tpu.pipeline_mode<synchronous>, transform_indices = @transform_3, window_bounds = array<i64: 256, 128>}, {pipeline_mode = #tpu.pipeline_mode<synchronous>, transform_indices = @transform_4, window_bounds = array<i64: 1, 128>}, {transform_indices = @transform_5, window_bounds = array<i64: 1, 8, 128>}]} {
    %c0 = arith.constant 0 : index
    %c0_0 = arith.constant 0 : index
    %c0_1 = arith.constant 0 : index
    %0 = vector.load %arg1[%c0, %c0_0, %c0_1] : memref<1x10x320xbf16, #tpu.memory_space<vmem>>, vector<1x8x320xbf16>
    %1 = vector.shape_cast %0 : vector<1x8x320xbf16> to vector<8x320xbf16>
    %c0_2 = arith.constant 0 : index
    %c0_3 = arith.constant 0 : index
    %c0_4 = arith.constant 0 : index
    %2 = vector.load %arg2[%c0_2, %c0_3, %c0_4] : memref<3x320x256xbf16, #tpu.memory_space<vmem>>, vector<1x320x256xbf16>
    %3 = vector.shape_cast %2 : vector<1x320x256xbf16> to vector<320x256xbf16>
    %cst = arith.constant dense<0.000000e+00> : vector<8x256xf32>
    %4 = tpu.matmul %1, %3, %cst {dimension_numbers = #tpu.dot_dimension_numbers<[1], [0], [0], [1], [0, 0, 1, 1], [], []>} : vector<8x320xbf16>, vector<320x256xbf16>, vector<8x256xf32> -> vector<8x256xf32>
    %c0_5 = arith.constant 0 : index
    %c1 = arith.constant 1 : index
    %c0_6 = arith.constant 0 : index
    %5 = vector.load %arg1[%c0_5, %c1, %c0_6] : memref<1x10x320xbf16, #tpu.memory_space<vmem>>, vector<1x8x320xbf16>
    %6 = vector.shape_cast %5 : vector<1x8x320xbf16> to vector<8x320xbf16>
    %c1_7 = arith.constant 1 : index
    %c0_8 = arith.constant 0 : index
    %c0_9 = arith.constant 0 : index
    %7 = vector.load %arg2[%c1_7, %c0_8, %c0_9] : memref<3x320x256xbf16, #tpu.memory_space<vmem>>, vector<1x320x256xbf16>
    %8 = vector.shape_cast %7 : vector<1x320x256xbf16> to vector<320x256xbf16>
    %cst_10 = arith.constant dense<0.000000e+00> : vector<8x256xf32>
    %9 = tpu.matmul %6, %8, %cst_10 {dimension_numbers = #tpu.dot_dimension_numbers<[1], [0], [0], [1], [0, 0, 1, 1], [], []>} : vector<8x320xbf16>, vector<320x256xbf16>, vector<8x256xf32> -> vector<8x256xf32>
    %10 = arith.addf %4, %9 : vector<8x256xf32>
    %c0_11 = arith.constant 0 : index
    %c2 = arith.constant 2 : index
    %c0_12 = arith.constant 0 : index
    %11 = vector.load %arg1[%c0_11, %c2, %c0_12] : memref<1x10x320xbf16, #tpu.memory_space<vmem>>, vector<1x8x320xbf16>
    %12 = vector.shape_cast %11 : vector<1x8x320xbf16> to vector<8x320xbf16>
    %c2_13 = arith.constant 2 : index
    %c0_14 = arith.constant 0 : index
    %c0_15 = arith.constant 0 : index
    %13 = vector.load %arg2[%c2_13, %c0_14, %c0_15] : memref<3x320x256xbf16, #tpu.memory_space<vmem>>, vector<1x320x256xbf16>
    %14 = vector.shape_cast %13 : vector<1x320x256xbf16> to vector<320x256xbf16>
    %cst_16 = arith.constant dense<0.000000e+00> : vector<8x256xf32>
    %15 = tpu.matmul %12, %14, %cst_16 {dimension_numbers = #tpu.dot_dimension_numbers<[1], [0], [0], [1], [0, 0, 1, 1], [], []>} : vector<8x320xbf16>, vector<320x256xbf16>, vector<8x256xf32> -> vector<8x256xf32>
    %16 = arith.addf %10, %15 : vector<8x256xf32>
    %c0_17 = arith.constant 0 : index
    %c0_18 = arith.constant 0 : index
    %17 = vector.load %arg3[%c0_17, %c0_18] : memref<1x256xf32, #tpu.memory_space<vmem>>, vector<1x256xf32>
    %18 = vector.broadcast %17 : vector<1x256xf32> to vector<8x256xf32>
    %19 = arith.addf %16, %18 : vector<8x256xf32>
    %cst_19 = arith.constant 0.000000e+00 : f32
    %20 = vector.broadcast %cst_19 : f32 to vector<8x256xf32>
    %21 = arith.maximumf %19, %20 : vector<8x256xf32>
    %22 = arith.truncf %21 : vector<8x256xf32> to vector<8x256xbf16>
    %c0_20 = arith.constant 0 : index
    %c0_21 = arith.constant 0 : index
    %23 = vector.load %arg4[%c0_20, %c0_21] : memref<256x128xbf16, #tpu.memory_space<vmem>>, vector<256x128xbf16>
    %cst_22 = arith.constant dense<0.000000e+00> : vector<8x128xf32>
    %24 = tpu.matmul %22, %23, %cst_22 {dimension_numbers = #tpu.dot_dimension_numbers<[1], [0], [0], [1], [0, 0, 1, 1], [], []>} : vector<8x256xbf16>, vector<256x128xbf16>, vector<8x128xf32> -> vector<8x128xf32>
    %c0_23 = arith.constant 0 : index
    %c0_24 = arith.constant 0 : index
    %25 = vector.load %arg5[%c0_23, %c0_24] : memref<1x128xf32, #tpu.memory_space<vmem>>, vector<1x128xf32>
    %26 = vector.broadcast %25 : vector<1x128xf32> to vector<8x128xf32>
    %27 = arith.addf %24, %26 : vector<8x128xf32>
    %c0_25 = arith.constant 0 : index
    %c0_26 = arith.constant 0 : index
    %c0_27 = arith.constant 0 : index
    %28 = vector.load %arg6[%c0_25, %c0_26, %c0_27] : memref<1x8x128xf32, #tpu.memory_space<vmem>>, vector<1x8x128xf32>
    %29 = vector.shape_cast %28 : vector<1x8x128xf32> to vector<8x128xf32>
    %30 = vector.shape_cast %27 : vector<8x128xf32> to vector<1x8x128xf32>
    tpu.vector_store %arg6[%c0_25, %c0_26, %c0_27], %30 {strides = array<i32>} : memref<1x8x128xf32, #tpu.memory_space<vmem>>, vector<1x8x128xf32>,
    return
  }
  func.func @transform_0(%arg0: i32) -> (i32, i32, i32) {
    %c0_i32 = arith.constant 0 : i32
    %c0_i32_0 = arith.constant 0 : i32
    %c0_i32_1 = arith.constant 0 : i32
    return %arg0, %c0_i32, %c0_i32_0 : i32, i32, i32
  }
  func.func @transform_1(%arg0: i32) -> (i32, i32, i32) {
    %c0_i32 = arith.constant 0 : i32
    %c0_i32_0 = arith.constant 0 : i32
    %c0_i32_1 = arith.constant 0 : i32
    %c0_i32_2 = arith.constant 0 : i32
    return %c0_i32, %c0_i32_0, %c0_i32_1 : i32, i32, i32
  }
  func.func @transform_2(%arg0: i32) -> (i32, i32) {
    %c0_i32 = arith.constant 0 : i32
    %c0_i32_0 = arith.constant 0 : i32
    %c0_i32_1 = arith.constant 0 : i32
    return %c0_i32, %c0_i32_0 : i32, i32
  }
  func.func @transform_3(%arg0: i32) -> (i32, i32) {
    %c0_i32 = arith.constant 0 : i32
    %c0_i32_0 = arith.constant 0 : i32
    %c0_i32_1 = arith.constant 0 : i32
    return %c0_i32, %c0_i32_0 : i32, i32
  }
  func.func @transform_4(%arg0: i32) -> (i32, i32) {
    %c0_i32 = arith.constant 0 : i32
    %c0_i32_0 = arith.constant 0 : i32
    %c0_i32_1 = arith.constant 0 : i32
    return %c0_i32, %c0_i32_0 : i32, i32
  }
  func.func @transform_5(%arg0: i32) -> (i32, i32, i32) {
    %c0_i32 = arith.constant 0 : i32
    %c0_i32_0 = arith.constant 0 : i32
    %c0_i32_1 = arith.constant 0 : i32
    return %arg0, %c0_i32, %c0_i32_0 : i32, i32, i32
  }
}

</mosaic_0001>

<bundles_post_ra>
// kernel: tile.28
= control target key start
LH: loop header
LB: loop body
LE: loop exit
PB: predicated region body
PF: predicated region fallthrough
CT: control target
= control target key end

     0   :  { %s22_s0 = inlined_call_operand.vmem [shape: f32[16], index: 0, kind: input, shape index: {}]   ;;  %s23_s1 = inlined_call_operand.vmem [shape: f32[8,16], index: 1, kind: output, shape index: {}]  }
   0x1   :  { %v4_v0 = vld [vmem:[%s22_s0] ss:$0 sm:$0xff] }
   0x2   :  { %5 = vst [vmem:[%s23_s1] sm:$0xff] %v4_v0 }

// kernel: tile.29
= control target key start
LH: loop header
LB: loop body
LE: loop exit
PB: predicated region body
PF: predicated region fallthrough
CT: control target
= control target key end

     0   :  { %s67_s10 = smov 112   ;;  %s68_s11 = smov 80   ;;  %vm3_vm0 = vcmask 130048   ;;  %vm9_vm1 = vcmask 1048448   ;;  %vm15_vm2 = vcmask 917248   ;;  %vm21_vm3 = vcmask 786048   ;;  %s111_s0 = inlined_call_operand.vmem [shape: f32[8,16], index: 0, kind: input, shape index: {}]   ;;  %s112_s1 = inlined_call_operand.vmem [shape: f32[1,128], index: 1, kind: output, shape index: {}]  }
   0x1   :  { %v53_v0 = vld [vmem:[%s111_s0 + $0x7] sm:$0x1]   ;;  %v55_v1 = vld [vmem:[%s111_s0 + $0x5] sm:$0x1]   ;;  %v54_v2 = vld [vmem:[%s111_s0 + $0x6] sm:$0x1]  }
   0x2   :  { %7 = vrot.lane.b32.xlu0 %v53_v0, %s67_s10  ;;  %19 = vrot.lane.b32.xlu1 %v55_v1, %s68_s11  ;;  %v56_v3 = vld [vmem:[%s111_s0 + $0x4] sm:$0x1]   ;;  %v2_v4 = vld [vmem:[%s111_s0] sm:$0x1]   ;;  %s69_s18 = smov 96   ;;  %s70_s19 = smov 64  }
   0x3   :  { %4 = vst.msk [vmem:[#allocation0] sm:$0x1] %vm3_vm0, %v2_v4   ;;  %v57_v5 = vld [vmem:[%s111_s0 + $0x3] sm:$0x1]   ;;  %v58_v6 = vld [vmem:[%s111_s0 + $0x2] sm:$0x1]  }
   0x4   :  { %s71_s24 = smov 48   ;;  %s72_s25 = smov 32   ;;  %v59_v7 = vld [vmem:[%s111_s0 + $0x1] sm:$0x1]   ;;  %vm27_vm4 = vcmask 654848   ;;  %vm33_vm5 = vcmask 523648  }
   0x5   :  { %s73_s0 = smov 16   ;;  %vm39_vm6 = vcmask 392448   ;;  %vm45_vm7 = vcmask 261248  }
   0x6   :  { %13 = vrot.lane.b32.xlu0 %v54_v2, %s69_s18  ;;  %25 = vrot.lane.b32.xlu1 %v56_v3, %s70_s19 }
   0xa   :  { %31 = vrot.lane.b32.xlu0 %v57_v5, %s71_s24  ;;  %37 = vrot.lane.b32.xlu1 %v58_v6, %s72_s25 }
   0xe   :  { %43 = vrot.lane.b32.xlu0 %v59_v7, %s73_s0 }
  0x74   :  { %v8_v8 = vpop.permute.xlu0 %7   ;;  %v20_v9 = vpop.permute.xlu1 %19  }
  0x75   :  { %10 = vst.msk [vmem:[#allocation0] sm:$0x1] %vm9_vm1, %v8_v8  }
  0x78   :  { %v14_v10 = vpop.permute.xlu0 %13   ;;  %v26_v11 = vpop.permute.xlu1 %25  }
  0x79   :  { %16 = vst.msk [vmem:[#allocation0] sm:$0x1] %vm15_vm2, %v14_v10  }
  0x7a   :  { %22 = vst.msk [vmem:[#allocation0] sm:$0x1] %vm21_vm3, %v20_v9  }
  0x7b   :  { %28 = vst.msk [vmem:[#allocation0] sm:$0x1] %vm27_vm4, %v26_v11  }
  0x7c   :  { %v32_v12 = vpop.permute.xlu0 %31   ;;  %v38_v13 = vpop.permute.xlu1 %37  }
  0x7d   :  { %34 = vst.msk [vmem:[#allocation0] sm:$0x1] %vm33_vm5, %v32_v12  }
  0x7e   :  { %40 = vst.msk [vmem:[#allocation0] sm:$0x1] %vm39_vm6, %v38_v13  }
  0x80   :  { %v44_v14 = vpop.permute.xlu0 %43  }
  0x81   :  { %46 = vst.msk [vmem:[#allocation0] sm:$0x1] %vm45_vm7, %v44_v14  }
  0x88   :  { %v50_v15 = vld [vmem:[#allocation0] sm:$0x1] }
  0x89   :  { %52 = vst [vmem:[%s112_s1] sm:$0x1] %v50_v15 }

// kernel: tile.33
= control target key start
LH: loop header
LB: loop body
LE: loop exit
PB: predicated region body
PF: predicated region fallthrough
CT: control target
= control target key end

     0   :  { %s22_s0 = inlined_call_operand.vmem [shape: f32[32], index: 0, kind: input, shape index: {}]   ;;  %s23_s1 = inlined_call_operand.vmem [shape: f32[4,32], index: 1, kind: output, shape index: {}]  }
   0x1   :  { %v4_v0 = vld [vmem:[%s22_s0] ss:$0 sm:$0xff] }
   0x2   :  { %5 = vst [vmem:[%s23_s1] sm:$0xf] %v4_v0 }

// kernel: tile.34
= control target key start
LH: loop header
LB: loop body
LE: loop exit
PB: predicated region body
PF: predicated region fallthrough
CT: control target
= control target key end

     0   :  { %vm7_vm0 = vcmask 261120   ;;  %s37_s8 = smov 32   ;;  %s38_s9 = smov 64   ;;  %vm13_vm1 = vcmask 1048320   ;;  %vm19_vm2 = vcmask 785920   ;;  %vm25_vm3 = vcmask 523520   ;;  %s55_s0 = inlined_call_operand.vmem [shape: f32[4,32], index: 0, kind: input, shape index: {}]   ;;  %s56_s1 = inlined_call_operand.vmem [shape: f32[1,128], index: 1, kind: output, shape index: {}]  }
   0x1   :  { %v4_v0 = vld [vmem:[%s55_s0] sm:$0xf]  ;;  %s36_s0 = smov 96  }
   0x2   :  { %5 = vst [vmem:[#allocation1] sm:$0xf] %v4_v0 }
   0x9   :  { %v10_v1 = vld [vmem:[#allocation1 + $0x3] sm:$0x1]   ;;  %v22_v2 = vld [vmem:[#allocation1 + $0x1] sm:$0x1]   ;;  %v6_v3 = vld [vmem:[#allocation1] sm:$0x1]  }
   0xa   :  { %11 = vrot.lane.b32.xlu0 %v10_v1, %s36_s0  ;;  %23 = vrot.lane.b32.xlu1 %v22_v2, %s37_s8  ;;  %v16_v4 = vld [vmem:[#allocation1 + $0x2] sm:$0x1]   ;;  %8 = vst.msk [vmem:[#allocation0] sm:$0x1] %vm7_vm0, %v6_v3  }
   0xe   :  { %17 = vrot.lane.b32.xlu0 %v16_v4, %s38_s9 }
  0x7c   :  { %v12_v5 = vpop.permute.xlu0 %11   ;;  %v24_v6 = vpop.permute.xlu1 %23  }
  0x7d   :  { %14 = vst.msk [vmem:[#allocation0] sm:$0x1] %vm13_vm1, %v12_v5  }
  0x80   :  { %v18_v7 = vpop.permute.xlu0 %17  }
  0x81   :  { %20 = vst.msk [vmem:[#allocation0] sm:$0x1] %vm19_vm2, %v18_v7  }
  0x82   :  { %26 = vst.msk [vmem:[#allocation0] sm:$0x1] %vm25_vm3, %v24_v6  }
  0x89   :  { %v30_v8 = vld [vmem:[#allocation0] sm:$0x1] }
  0x8a   :  { %32 = vst [vmem:[%s56_s1] sm:$0x1] %v30_v8 }

// kernel: model_forward.4
= control target key start
LH: loop header
LB: loop body
LE: loop exit
PB: predicated region body
PF: predicated region fallthrough
CT: control target
= control target key end

     0   :  { %s934_s15 = smov 0   ;;  %s1061_s0 = inlined_call_operand.vmem [shape: bf16[2,18,72], index: 0, kind: input, shape index: {}]   ;;  %s1062_s1 = inlined_call_operand.vmem [shape: bf16[3,8,18], index: 1, kind: input, shape index: {}]   ;;  %s1063_s2 = inlined_call_operand.vmem [shape: bf16[3,72,128], index: 2, kind: input, shape index: {}]   ;;  %s1064_s3 = inlined_call_operand.vmem [shape: f32[1,128], index: 3, kind: input, shape index: {}]   ;;  %s1065_s4 = inlined_call_operand.vmem [shape: bf16[2,10,160], index: 4, kind: output, shape index: {}]  }
   0x1 LB: > { %s717_s16 = sadd.s32 4294967295, %s903_s15   ;;  %p721_p0 = scmp.ge.s32.totalorder %s903_s15, 1  ;;  %s903_s15 = sphi %s934_s15, %s14_s15  }
   0x2   : > { %p162_p1 = scmp.lt.s32.totalorder %s903_s15, 3 }
   0x4   : > { %p163_p2 = pnand %p721_p0, %p162_p1 }
   0x5   : > { %p188_p3 = scmp.lt.s32.totalorder (!%p163_p2), %s717_s16, 1  ;;  %vm216_vm0 = vcmask (!%p163_p2), 1040384   ;;  %vm616_vm1 = vcmask (!%p163_p2), 258052   ;;  %v882_v0 = vld [vmem:[%s1063_s2] sm:$0xff] (!%p163_p2)   ;;  %v905_v1 = vmov (!%p163_p2), 0.0   ;;  %vm906_vm3 = vmmov (!%p163_p2), 0  }
   0x6   : > { %166 = sbr.rel (%p163_p2) target bundleno = 819 (0x333), region = 36  ;;  %801 = vmatprep.subr.bf16.mxu0 (!%p163_p2), %v905_v1  ;;  %vm617_vm2 = vmor (!%p163_p2), %vm616_vm1, %vm216_vm0  ;;  %831 = vmatprep.subr.bf16.mxu1 (!%p163_p2), %v905_v1  ;;  %v883_v2 = vld [vmem:[%s1063_s2 + $0x8] sm:$0xff] (!%p163_p2)   ;;  %v907_v3 = vmov (!%p163_p2), 0   ;;  %v885_v4 = vld [vmem:[%s1063_s2 + $0x10] sm:$0xff] (!%p163_p2)   ;;  %vm212_vm4 = vcmask (!%p163_p2), 146432   ;;  %vm357_vm5 = vcmask (!%p163_p2), 1043456  }
   0x7   : > { %805 = vmatprep.mubr.msk.bf16.mxu0 (!%p163_p2), %vm906_vm3, %v905_v1  ;;  %832 = vmatpush3.bf16.msra.mxu1 (!%p163_p2), %v882_v0  ;;  %v887_v8 = vld [vmem:[%s1063_s2 + $0x18] sm:$0xff] (!%p163_p2)   ;;  %v202_v9 = vld [vmem:[%s1062_s1] sm:$0xf] (!%p163_p2)  ;;  %v728_v10 = vld [vmem:[%s1062_s1 + $0x4] sm:$0xf] (!%p163_p2)  ;;  %vm613_vm6 = vcmask (!%p163_p2), 261124  }
   0x8   : > { %833 = vmatprep.subr.bf16.mxu1 (!%p163_p2), %v905_v1  ;;  %841 = vmatprep.mubr.msk.bf16.mxu1 (!%p163_p2), %vm906_vm3, %v905_v1  ;;  %v884_v11 = vld [vmem:[%s1063_s2 + $0x24] sm:$0xff] (!%p163_p2)   ;;  %v886_v12 = vld [vmem:[%s1063_s2 + $0x2c] sm:$0xff] (!%p163_p2)   ;;  %v889_v13 = vld [vmem:[%s1063_s2 + $0x20] ss:$0 sps:$4 sm:$0xff] (!%p163_p2)   ;;  %vm353_vm8 = vcmask (!%p163_p2), 588800   ;;  %s908_s13 = smov (!%p163_p2), 16  }
   0x9   : > { %v888_v14 = vld [vmem:[%s1063_s2 + $0x34] sm:$0xff] (!%p163_p2)   ;;  %v432_v15 = vsel (!%p163_p2), %vm357_vm5, %v889_v13, 0  ;;  %vm614_vm7 = vmor (!%p163_p2), %vm613_vm6, %vm357_vm5  ;;  %v890_v16 = vld [vmem:[%s1063_s2 + $0x3c] sm:$0xff] (!%p163_p2)   ;;  %vm642_vm9 = vcmask (!%p163_p2), 1043584   ;;  %vm643_vm10 = vsmask.f32 (!%p163_p2), 7938 }
   0xa   : > { %v891_v17 = vld [vmem:[%s1063_s2 + $0x44] ss:$0 sps:$4 sm:$0xff] (!%p163_p2)   ;;  %v751_v29 = vld [vmem:[%s1062_s1 + $0x8] sm:$0xf] (!%p163_p2)  ;;  %v893_v31 = vld [vmem:[%s1063_s2 + $0x50] sm:$0xff] (!%p163_p2)   ;;  %vm645_vm11 = vcmask (!%p163_p2), 130052  }
   0xb   : > { %834 = vmatpush3.bf16.msra.mxu1 (!%p163_p2), %v883_v2  ;;  %v359_v18 = vsel (!%p163_p2), %vm357_vm5, %v891_v17, 0  ;;  %v892_v30 = vld [vmem:[%s1063_s2 + $0x48] sm:$0xff] (!%p163_p2)   ;;  %v894_v32 = vld [vmem:[%s1063_s2 + $0x58] sm:$0xff] (!%p163_p2)   ;;  %v895_v33 = vld [vmem:[%s1063_s2 + $0x60] sm:$0xff] (!%p163_p2)   ;;  %vm646_vm12 = vsmask.f32 (!%p163_p2), 7954 }
   0xc   : > { %835 = vmatprep.subr.bf16.mxu1 (!%p163_p2), %v905_v1  ;;  %v896_v34 = vld [vmem:[%s1063_s2 + $0x68] ss:$0 sps:$4 sm:$0xff] (!%p163_p2)   ;;  %v768_v51 = vld [vmem:[%s1064_s3] ss:$0 sm:$0xff] (!%p163_p2)  ;;  %vm644_vm13 = vmand (!%p163_p2), %vm642_vm9, %vm643_vm10  ;;  %vm652_vm15 = vcmask (!%p163_p2), 1040512   ;;  %vm655_vm1 = vcmask (!%p163_p2), 126980  }
   0xd   : > { %s1067_s16 = smov (!%p188_p3, %s717_s16), 1  ;;  %v561_v35 = vsel %vm357_vm5, %v896_v34, 0  ;;  %vm647_vm14 = vmand %vm645_vm11, %vm646_vm12 }
   0xe   : > { %s867_s21 = smul.u32 12, %s1067_s16  ;;  %s772_s22 = sshll.u32 %s1067_s16, 4 }
   0xf   : > { %s959_s25 = scalar_lea.vmem %s1065_s4, %s772_s22  ;;  %836 = vmatpush3.bf16.msra.mxu1 %v885_v4 }
  0x10   : > { %s192_s28 = scalar_lea.vmem %s1061_s0, %s867_s21  ;;  %618 = vst.msk [vmem:[%s959_s25 + $0x8] sm:$0x11] %vm617_vm2, %v907_v3  ;;  %837 = vmatprep.subr.bf16.mxu1 %v905_v1  ;;  %vm656_vm2 = vsmask.f32 4352 }
  0x11   : > { %v880_v5 = vld [vmem:[%s192_s28] sm:$0xff]   ;;  %v881_v6 = vld [vmem:[%s192_s28 + $0x8] ss:$0 sps:$4 sm:$0x11]   ;;  %615 = vst.msk [vmem:[%s959_s25] sm:$0xff] %vm614_vm7, %v907_v3  ;;  %vm657_vm6 = vmand %vm655_vm1, %vm656_vm2 }
  0x12   : > { %802 = vmatpush3.bf16.msra.mxu0 %v880_v5  ;;  %v218_v7 = vsel %vm216_vm0, %v881_v6, 0  ;;  %vm653_vm0 = vsmask.f32 256 }
  0x13   : > { %803 = vmatprep.subr.bf16.mxu0 %v905_v1  ;;  %838 = vmatpush3.bf16.msra.mxu1 %v887_v8  ;;  %vm654_vm5 = vmand %vm652_vm15, %vm653_vm0 }
  0x14   : > { %839 = vmatprep.subr.bf16.mxu1 %v905_v1  ;;  %vm658_vm7 = vmor %vm657_vm6, %vm654_vm5 }
  0x16   : > { %804 = vmatpush3.bf16.msra.mxu0 %v218_v7 }
  0x17   : > { %809 = vmatprep.subr.bf16.mxu0 %v905_v1  ;;  %840 = vmatpush3.bf16.msra.mxu1 %v432_v15  ;;  %v659_v6 = vld [vmem:[%s959_s25 + $0x8] sm:$0x11] }
  0x18   : > { %853 = vmatprep.subr.bf16.mxu1 %v905_v1 }
  0x19   : > { %806 = vmatmul.mubr.msk.bf16.vlgmr.msra.gmra.mrb[0].mxu0 %vm212_vm4, %v202_v9 }
  0x1a   : > { %810 = vmatpush3.bf16.msra.mxu0 %v880_v5  ;;  %813 = vmatprep.mubr.msk.bf16.mxu0 %vm906_vm3, %v905_v1 }
  0x1b   : > { %811 = vmatprep.subr.bf16.mxu0 %v905_v1 }
  0x1e   : > { %812 = vmatpush3.bf16.msra.mxu0 %v218_v7 }
  0x1f   : > { %817 = vmatprep.subr.bf16.mxu0 %v905_v1 }
  0x21   : > { %814 = vmatmul.mubr.msk.bf16.vlgmr.msra.gmra.mrb[4].mxu0 %vm212_vm4, %v728_v10 }
  0x22   : > { %818 = vmatpush3.bf16.msra.mxu0 %v884_v11  ;;  %827 = vmatprep.mubr.msk.bf16.mxu0 %vm906_vm3, %v905_v1 }
  0x23   : > { %819 = vmatprep.subr.bf16.mxu0 %v905_v1 }
  0x26   : > { %820 = vmatpush3.bf16.msra.mxu0 %v886_v12 }
  0x27   : > { %821 = vmatprep.subr.bf16.mxu0 %v905_v1 }
  0x2a   : > { %822 = vmatpush3.bf16.msra.mxu0 %v888_v14 }
  0x2b   : > { %823 = vmatprep.subr.bf16.mxu0 %v905_v1 }
  0x2e   : > { %824 = vmatpush3.bf16.msra.mxu0 %v890_v16 }
  0x2f   : > { %825 = vmatprep.subr.bf16.mxu0 %v905_v1 }
  0x32   : > { %826 = vmatpush3.bf16.msra.mxu0 %v359_v18 }
  0x33   : > { %845 = vmatprep.subr.bf16.mxu0 %v905_v1 }
  0xec   : > { %v254_v19 = vpop.f32.mrb[0].mxu0 }
  0xed   : > { %v260_v20 = vpack.c.bf16 %v254_v19, %v254_v19  ;;  %v807_v21 = vpop.f32.mrb[1].mxu0 }
  0xee   : > { %v257_v22 = vpop.f32.mrb[2].mxu0 }
  0xef   : > { %v808_v23 = vpop.f32.mrb[3].mxu0  ;;  %842 = vmatmul.mubr.msk.bf16.vlgmr.msra.gmra.mrb[0].mxu1 %vm353_vm8, %v260_v20 }
  0xf0   : > { %863 = vmatprep.mubr.msk.bf16.mxu1 %vm906_vm3, %v905_v1  ;;  %854 = vmatpush3.bf16.msra.mxu1 %v892_v30 }
  0xf1   : > { %855 = vmatprep.subr.bf16.mxu1 %v905_v1 }
  0xf4   : > { %v309_v24 = vpop.f32.mrb[4].mxu0  ;;  %856 = vmatpush3.bf16.msra.mxu1 %v893_v31 }
  0xf5   : > { %v315_v25 = vpack.c.bf16 %v309_v24, %v309_v24  ;;  %v815_v26 = vpop.f32.mrb[5].mxu0  ;;  %857 = vmatprep.subr.bf16.mxu1 %v905_v1 }
  0xf6   : > { %v312_v27 = vpop.f32.mrb[6].mxu0 }
  0xf7   : > { %v816_v28 = vpop.f32.mrb[7].mxu0  ;;  %828 = vmatmul.mubr.msk.bf16.vlgmr.msra.gmra.mrb[8].mxu0 %vm353_vm8, %v315_v25 }
  0xf8   : > { %846 = vmatpush3.bf16.msra.mxu0 %v880_v5  ;;  %849 = vmatprep.mubr.msk.bf16.mxu0 %vm906_vm3, %v905_v1  ;;  %vm637_vm3 = vcmask 130048  }
  0xf9   : > { %847 = vmatprep.subr.bf16.mxu0 %v905_v1  ;;  %858 = vmatpush3.bf16.msra.mxu1 %v894_v32 }
  0xfa   : > { %859 = vmatprep.subr.bf16.mxu1 %v905_v1 }
  0xfc   : > { %848 = vmatpush3.bf16.msra.mxu0 %v218_v7 }
  0xfd   : > { %860 = vmatpush3.bf16.msra.mxu1 %v895_v33 }
  0xfe   : > { %861 = vmatprep.subr.bf16.mxu1 %v905_v1  ;;  %v649_v1 = vld [vmem:[%s959_s25] sm:$0xff] }
  0xff   : > { %850 = vmatmul.mubr.msk.bf16.vlgmr.msra.gmra.mrb[12].mxu0 %vm212_vm4, %v751_v29  ;;  %vm648_vm4 = vmor %vm647_vm14, %vm644_vm13 }
 0x101   : > { %862 = vmatpush3.bf16.msra.mxu1 %v561_v35 }
 0x1c2   : > { %v468_v36 = vpop.f32.mrb[0].mxu1 }
 0x1c3   : > { %v843_v37 = vpop.f32.mrb[1].mxu1 }
 0x1c4   : > { %v471_v38 = vpop.f32.mrb[2].mxu1 }
 0x1c5   : > { %v844_v39 = vpop.f32.mrb[3].mxu1 }
 0x1ca   : > { %v395_v40 = vpop.f32.mrb[8].mxu0 }
 0x1cb   : > { %v469_v41 = vadd.f32 %v468_v36, %v395_v40  ;;  %v829_v42 = vpop.f32.mrb[9].mxu0 }
 0x1cc   : > { %v398_v43 = vpop.f32.mrb[10].mxu0 }
 0x1cd   : > { %v830_v44 = vpop.f32.mrb[11].mxu0 }
 0x1d2   : > { %v513_v45 = vpop.f32.mrb[12].mxu0 }
 0x1d3   : > { %v519_v46 = vpack.c.bf16 %v513_v45, %v513_v45  ;;  %v851_v47 = vpop.f32.mrb[13].mxu0 }
 0x1d4   : > { %v516_v48 = vpop.f32.mrb[14].mxu0 }
 0x1d5   : > { %v852_v49 = vpop.f32.mrb[15].mxu0  ;;  %864 = vmatmul.mubr.msk.bf16.vlgmr.msra.gmra.mrb[4].mxu1 %vm353_vm8, %v519_v46 }
 0x2a8   : > { %v597_v50 = vpop.f32.mrb[4].mxu1 }
 0x2a9   : > { %v603_v52 = vadd.f32 %v597_v50, %v469_v41  ;;  %v865_v53 = vpop.f32.mrb[5].mxu1 }
 0x2aa   : > { %v600_v54 = vpop.f32.mrb[6].mxu1 }
 0x2ab   : > { %v611_v55 = vadd.f32 %v768_v51, %v603_v52  ;;  %v866_v56 = vpop.f32.mrb[7].mxu1 }
 0x2ad   : > { %v612_v57 = vmax.f32 %v611_v55, 0.0 }
 0x2af   : > { %v773_v58 = vpack.c.bf16 %v612_v57, %v612_v57 }
 0x2b1   : > { %v624_v59 = vshrl.u32 %v773_v58, 16  ;;  %v627_v61 = vshll.u32 %v773_v58, 16 }
 0x2b3   : > { %v626_v60 = vrot.slane %v624_v59, 7 }
 0x2b5   : > { %v629_v62 = vor.u32 %v627_v61, %v626_v60  ;;  %v630_v63 = vrot.slane %v626_v60, 4 }
 0x2b7   : > { %631 = vrot.lane.b32.xlu0 %v629_v62, %s908_s13 }
 0x2bb   : > { %633 = vrot.lane.b32.xlu0 %v630_v63, %s908_s13 }
 0x329   : > { %v632_v0 = vpop.permute.xlu0 %631 }
 0x32a   : > { %v635_v2 = vrot.slane %v632_v0, 4 }
 0x32c   : > { %v638_v3 = vsel %vm637_vm3, %v635_v2, %v632_v0 }
 0x32d   : > { %v650_v4 = vsel %vm648_vm4, %v638_v3, %v649_v1  ;;  %v634_v5 = vpop.permute.xlu0 %633 }
 0x32e   : > { %651 = vst [vmem:[%s959_s25] sm:$0xff] %v650_v4  ;;  %v636_v7 = vrot.slane %v634_v5, 4 }
 0x330   : > { %v639_v8 = vsel %vm637_vm3, %v636_v7, %v634_v5 }
 0x331   : > { %v660_v9 = vsel %vm658_vm7, %v639_v8, %v659_v6 }
 0x332   : > { %661 = vst [vmem:[%s959_s25 + $0x8] sm:$0x11] %v660_v9 }
 0x333 PF: > { %s14_s15 = sadd.s32 1, %s903_s15  }
 0x334   : > { %p11_p4 = scmp.ge.s32.totalorder %s14_s15, 4  }
 0x336   :  { %13 = sbr.rel (!%p11_p4) target bundleno = 1 (0x1), region = 70 }

// kernel: model_forward.5
= control target key start
LH: loop header
LB: loop body
LE: loop exit
PB: predicated region body
PF: predicated region fallthrough
CT: control target
= control target key end

     0   :  { %s966_s15 = smov 0   ;;  %s1142_s0 = inlined_call_operand.vmem [shape: bf16[2,10,160], index: 0, kind: input, shape index: {}]   ;;  %s1143_s1 = inlined_call_operand.vmem [shape: bf16[3,4,10], index: 1, kind: input, shape index: {}]   ;;  %s1144_s2 = inlined_call_operand.vmem [shape: bf16[3,160,128], index: 2, kind: input, shape index: {}]   ;;  %s1145_s3 = inlined_call_operand.vmem [shape: f32[1,128], index: 3, kind: input, shape index: {}]   ;;  %s1146_s4 = inlined_call_operand.vmem [shape: bf16[2,4,128], index: 4, kind: output, shape index: {}]  }
   0x1 LB: > { %s795_s16 = sadd.s32 4294967295, %s938_s15   ;;  %p799_p0 = scmp.ge.s32.totalorder %s938_s15, 1  ;;  %s938_s15 = sphi %s966_s15, %s14_s15  }
   0x2   : > { %p162_p1 = scmp.lt.s32.totalorder %s938_s15, 3 }
   0x4   : > { %p163_p2 = pnand %p799_p0, %p162_p1 }
   0x5   : > { %p187_p3 = scmp.lt.s32.totalorder (!%p163_p2), %s795_s16, 1  ;;  %v940_v0 = vmov (!%p163_p2), 0   ;;  %v902_v1 = vld [vmem:[%s1144_s2] sm:$0xff] (!%p163_p2)   ;;  %v903_v2 = vld [vmem:[%s1144_s2 + $0x8] sm:$0xff] (!%p163_p2)   ;;  %vm212_vm0 = vcmask (!%p163_p2), 1044480   ;;  %v905_v6 = vld [vmem:[%s1144_s2 + $0x10] sm:$0xff] (!%p163_p2)  }
   0x6   : > { %166 = sbr.rel (%p163_p2) target bundleno = 690 (0x2b2), region = 36  ;;  %251 = vmatprep.mubr.bf16.mxu0 (!%p163_p2), %v940_v0  ;;  %518 = vmatprep.subr.bf16.mxu1 (!%p163_p2), %v940_v0  ;;  %v199_v5 = vld [vmem:[%s1143_s1] sm:$0x3] (!%p163_p2)  ;;  %vm208_vm1 = vcmask (!%p163_p2), 80896   ;;  %v907_v8 = vld [vmem:[%s1144_s2 + $0x18] sm:$0xff] (!%p163_p2)   ;;  %v904_v11 = vld [vmem:[%s1144_s2 + $0x50] sm:$0xff] (!%p163_p2)  }
   0x7   : > { %519 = vmatpush1.bf16.msra.mxu1 (!%p163_p2), %v902_v1  ;;  %v807_v9 = vld [vmem:[%s1143_s1 + $0x2] sm:$0x3] (!%p163_p2)  ;;  %v911_v12 = vld [vmem:[%s1144_s2 + $0x28] sm:$0xff] (!%p163_p2)   ;;  %v906_v13 = vld [vmem:[%s1144_s2 + $0x58] sm:$0xff] (!%p163_p2)   ;;  %vm411_vm2 = vcmask (!%p163_p2), 261120  }
   0x8   : > { %520 = vmatprep.subr.bf16.mxu1 (!%p163_p2), %v940_v0  ;;  %v909_v10 = vld [vmem:[%s1144_s2 + $0x20] sm:$0xff] (!%p163_p2)   ;;  %v913_v14 = vld [vmem:[%s1144_s2 + $0x30] sm:$0xff] (!%p163_p2)   ;;  %v915_v16 = vld [vmem:[%s1144_s2 + $0x38] sm:$0xff] (!%p163_p2)  }
   0x9   : > { %v908_v15 = vld [vmem:[%s1144_s2 + $0x60] sm:$0xff] (!%p163_p2)   ;;  %v910_v17 = vld [vmem:[%s1144_s2 + $0x68] sm:$0xff] (!%p163_p2)   ;;  %v912_v19 = vld [vmem:[%s1144_s2 + $0x70] sm:$0xff] (!%p163_p2)  }
   0xa   : > { %v917_v18 = vld [vmem:[%s1144_s2 + $0x40] sm:$0xff] (!%p163_p2)   ;;  %v914_v20 = vld [vmem:[%s1144_s2 + $0x78] sm:$0xff] (!%p163_p2)   ;;  %v918_v22 = vld [vmem:[%s1144_s2 + $0x88] sm:$0xff] (!%p163_p2)  }
   0xb   : > { %521 = vmatpush1.bf16.msra.mxu1 (!%p163_p2), %v903_v2  ;;  %v916_v21 = vld [vmem:[%s1144_s2 + $0x80] sm:$0xff] (!%p163_p2)   ;;  %v919_v23 = vld [vmem:[%s1144_s2 + $0x48] sm:$0xff] (!%p163_p2)   ;;  %v920_v24 = vld [vmem:[%s1144_s2 + $0x90] sm:$0xff] (!%p163_p2)  }
   0xc   : > { %522 = vmatprep.subr.bf16.mxu1 (!%p163_p2), %v940_v0  ;;  %v921_v25 = vld [vmem:[%s1144_s2 + $0x98] sm:$0xff] (!%p163_p2)   ;;  %v922_v30 = vld [vmem:[%s1144_s2 + $0xa0] sm:$0xff] (!%p163_p2)   ;;  %v923_v33 = vld [vmem:[%s1144_s2 + $0xa8] sm:$0xff] (!%p163_p2)  }
   0xd   : > { %s1148_s16 = smov (!%p187_p3, %s795_s16), 1  ;;  %v924_v40 = vld [vmem:[%s1144_s2 + $0xb0] sm:$0xff]   ;;  %v925_v41 = vld [vmem:[%s1144_s2 + $0xb8] sm:$0xff]   ;;  %v852_v42 = vld [vmem:[%s1143_s1 + $0x4] sm:$0x3] }
   0xe   : > { %s889_s19 = sshll.u32 %s1148_s16, 4  ;;  %v926_v43 = vld [vmem:[%s1144_s2 + $0xc0] sm:$0xff]   ;;  %v927_v44 = vld [vmem:[%s1144_s2 + $0xc8] sm:$0xff]   ;;  %v928_v45 = vld [vmem:[%s1144_s2 + $0xd0] sm:$0xff]   ;;  %s802_s17 = sshll.u32 %s1148_s16, 1 }
   0xf   : > { %s191_s24 = scalar_lea.vmem %s1142_s0, %s889_s19  ;;  %523 = vmatpush1.bf16.msra.mxu1 %v905_v6  ;;  %v929_v46 = vld [vmem:[%s1144_s2 + $0xd8] sm:$0xff]   ;;  %v930_v47 = vld [vmem:[%s1144_s2 + $0xe0] sm:$0xff]   ;;  %v931_v48 = vld [vmem:[%s1144_s2 + $0xe8] sm:$0xff]   ;;  %s195_s20 = scalar_lea.vmem %s1146_s4, %s802_s17 }
  0x10   : > { %v989_v3 = vld [vmem:[%s191_s24 + $0x4] ss:$8 sps:$4 sm:$0x1f]   ;;  %v901_v4 = vld [vmem:[%s191_s24] ss:$8 sps:$4 sm:$0x1f]   ;;  %524 = vmatprep.subr.bf16.mxu1 %v940_v0 }
  0x11   : > { %805 = vmatprep.subr.msk.bf16.mxu0 %vm212_vm0, %v989_v3  ;;  %v1000_v7 = vsel %vm212_vm0, %v901_v4, 0  ;;  %v886_v1 = vld [vmem:[%s1145_s3] ss:$0 sm:$0xff] }
  0x12   : > { %220 = vmatpush1.bf16.msra.mxu0 %v1000_v7 }
  0x13   : > { %808 = vmatprep.subr.msk.bf16.mxu0 %vm212_vm0, %v989_v3  ;;  %525 = vmatpush1.bf16.msra.mxu1 %v907_v8 }
  0x14   : > { %526 = vmatprep.subr.bf16.mxu1 %v940_v0 }
  0x15   : > { %806 = vmatmul.mubr.msk.bf16.vlgmr.msra.gmra.mrb[0].mxu0 %vm208_vm1, %v199_v5 }
  0x16   : > { %288 = vmatpush1.bf16.msra.mxu0 %v1000_v7  ;;  %319 = vmatprep.mubr.bf16.mxu0 %v940_v0 }
  0x17   : > { %415 = vmatprep.subr.bf16.mxu0 %v940_v0  ;;  %527 = vmatpush1.bf16.msra.mxu1 %v909_v10 }
  0x18   : > { %528 = vmatprep.subr.bf16.mxu1 %v940_v0 }
  0x1b   : > { %529 = vmatpush1.bf16.msra.mxu1 %v911_v12 }
  0x1c   : > { %530 = vmatprep.subr.bf16.mxu1 %v940_v0 }
  0x1d   : > { %809 = vmatmul.mubr.msk.bf16.vlgmr.msra.gmra.mrb[4].mxu0 %vm208_vm1, %v807_v9 }
  0x1e   : > { %416 = vmatpush1.bf16.msra.mxu0 %v904_v11 }
  0x1f   : > { %417 = vmatprep.subr.bf16.mxu0 %v940_v0  ;;  %531 = vmatpush1.bf16.msra.mxu1 %v913_v14 }
  0x20   : > { %532 = vmatprep.subr.bf16.mxu1 %v940_v0 }
  0x22   : > { %418 = vmatpush1.bf16.msra.mxu0 %v906_v13 }
  0x23   : > { %419 = vmatprep.subr.bf16.mxu0 %v940_v0  ;;  %533 = vmatpush1.bf16.msra.mxu1 %v915_v16 }
  0x24   : > { %534 = vmatprep.subr.bf16.mxu1 %v940_v0 }
  0x26   : > { %420 = vmatpush1.bf16.msra.mxu0 %v908_v15 }
  0x27   : > { %421 = vmatprep.subr.bf16.mxu0 %v940_v0  ;;  %535 = vmatpush1.bf16.msra.mxu1 %v917_v18 }
  0x28   : > { %536 = vmatprep.subr.bf16.mxu1 %v940_v0 }
  0x2a   : > { %422 = vmatpush1.bf16.msra.mxu0 %v910_v17 }
  0x2b   : > { %423 = vmatprep.subr.bf16.mxu0 %v940_v0  ;;  %537 = vmatpush1.bf16.msra.mxu1 %v919_v23 }
  0x2c   : > { %690 = vmatprep.subr.bf16.mxu1 %v940_v0 }
  0x2e   : > { %424 = vmatpush1.bf16.msra.mxu0 %v912_v19 }
  0x2f   : > { %425 = vmatprep.subr.bf16.mxu0 %v940_v0 }
  0x32   : > { %426 = vmatpush1.bf16.msra.mxu0 %v914_v20 }
  0x33   : > { %427 = vmatprep.subr.bf16.mxu0 %v940_v0 }
  0x36   : > { %428 = vmatpush1.bf16.msra.mxu0 %v916_v21 }
  0x37   : > { %429 = vmatprep.subr.bf16.mxu0 %v940_v0 }
  0x3a   : > { %430 = vmatpush1.bf16.msra.mxu0 %v918_v22 }
  0x3b   : > { %431 = vmatprep.subr.bf16.mxu0 %v940_v0 }
  0x3e   : > { %432 = vmatpush1.bf16.msra.mxu0 %v920_v24 }
  0x3f   : > { %433 = vmatprep.subr.bf16.mxu0 %v940_v0 }
  0x42   : > { %434 = vmatpush1.bf16.msra.mxu0 %v921_v25 }
  0x43   : > { %853 = vmatprep.subr.msk.bf16.mxu0 %vm212_vm0, %v989_v3 }
  0xe8   : > { %v253_v26 = vpop.f32.mrb[0].mxu0 }
  0xe9   : > { %v255_v27 = vpop.f32.mrb[1].mxu0  ;;  %v260_v31 = vpack.c.bf16 %v253_v26, %v253_v26 }
  0xea   : > { %v261_v28 = vpack.c.bf16 %v255_v27, %v255_v27  ;;  %v257_v29 = vpop.f32.mrb[2].mxu0 }
  0xeb   : > { %v258_v32 = vpop.f32.mrb[3].mxu0 }
  0xec   : > { %851 = vmatprep.mubr.msk.bf16.mxu1 %vm411_vm2, %v261_v28 }
  0xed   : > { %551 = vmatmul.mubr.bf16.vlgmr.msra.gmra.mrb[0].mxu1 %v260_v31 }
  0xee   : > { %691 = vmatpush1.bf16.msra.mxu1 %v922_v30 }
  0xef   : > { %692 = vmatprep.subr.bf16.mxu1 %v940_v0 }
  0xf0   : > { %v321_v34 = vpop.f32.mrb[4].mxu0 }
  0xf1   : > { %v323_v35 = vpop.f32.mrb[5].mxu0  ;;  %v328_v38 = vpack.c.bf16 %v321_v34, %v321_v34 }
  0xf2   : > { %v329_v36 = vpack.c.bf16 %v323_v35, %v323_v35  ;;  %v325_v37 = vpop.f32.mrb[6].mxu0  ;;  %693 = vmatpush1.bf16.msra.mxu1 %v923_v33 }
  0xf3   : > { %v326_v39 = vpop.f32.mrb[7].mxu0  ;;  %694 = vmatprep.subr.bf16.mxu1 %v940_v0 }
  0xf4   : > { %840 = vmatprep.mubr.msk.bf16.mxu0 %vm411_vm2, %v329_v36 }
  0xf5   : > { %448 = vmatmul.mubr.bf16.vlgmr.msra.gmra.mrb[8].mxu0 %v328_v38 }
  0xf6   : > { %564 = vmatpush1.bf16.msra.mxu0 %v1000_v7  ;;  %595 = vmatprep.mubr.bf16.mxu0 %v940_v0 }
  0xf7   : > { %695 = vmatpush1.bf16.msra.mxu1 %v924_v40 }
  0xf8   : > { %696 = vmatprep.subr.bf16.mxu1 %v940_v0 }
  0xfb   : > { %697 = vmatpush1.bf16.msra.mxu1 %v925_v41 }
  0xfc   : > { %698 = vmatprep.subr.bf16.mxu1 %v940_v0 }
  0xfd   : > { %854 = vmatmul.mubr.msk.bf16.vlgmr.msra.gmra.mrb[12].mxu0 %vm208_vm1, %v852_v42 }
  0xff   : > { %699 = vmatpush1.bf16.msra.mxu1 %v926_v43 }
 0x100   : > { %700 = vmatprep.subr.bf16.mxu1 %v940_v0 }
 0x103   : > { %701 = vmatpush1.bf16.msra.mxu1 %v927_v44 }
 0x104   : > { %702 = vmatprep.subr.bf16.mxu1 %v940_v0 }
 0x107   : > { %703 = vmatpush1.bf16.msra.mxu1 %v928_v45 }
 0x108   : > { %704 = vmatprep.subr.bf16.mxu1 %v940_v0 }
 0x10b   : > { %705 = vmatpush1.bf16.msra.mxu1 %v929_v46 }
 0x10c   : > { %706 = vmatprep.subr.bf16.mxu1 %v940_v0 }
 0x10f   : > { %707 = vmatpush1.bf16.msra.mxu1 %v930_v47 }
 0x110   : > { %708 = vmatprep.subr.bf16.mxu1 %v940_v0 }
 0x113   : > { %709 = vmatpush1.bf16.msra.mxu1 %v931_v48 }
 0x1c0   : > { %v552_v49 = vpop.f32.mrb[0].mxu1 }
 0x1c1   : > { %v554_v50 = vpop.f32.mrb[1].mxu1 }
 0x1c2   : > { %v555_v51 = vpop.f32.mrb[2].mxu1 }
 0x1c3   : > { %v556_v52 = vpop.f32.mrb[3].mxu1 }
 0x1c8   : > { %v449_v53 = vpop.f32.mrb[8].mxu0 }
 0x1c9   : > { %v553_v54 = vadd.f32 %v552_v49, %v449_v53  ;;  %v451_v55 = vpop.f32.mrb[9].mxu0 }
 0x1ca   : > { %v452_v56 = vpop.f32.mrb[10].mxu0 }
 0x1cb   : > { %v453_v57 = vpop.f32.mrb[11].mxu0 }
 0x1d0   : > { %v597_v58 = vpop.f32.mrb[12].mxu0 }
 0x1d1   : > { %v599_v59 = vpop.f32.mrb[13].mxu0  ;;  %v604_v62 = vpack.c.bf16 %v597_v58, %v597_v58 }
 0x1d2   : > { %v605_v60 = vpack.c.bf16 %v599_v59, %v599_v59  ;;  %v601_v61 = vpop.f32.mrb[14].mxu0 }
 0x1d3   : > { %v602_v63 = vpop.f32.mrb[15].mxu0 }
 0x1d4   : > { %885 = vmatprep.mubr.msk.bf16.mxu1 %vm411_vm2, %v605_v60 }
 0x1d5   : > { %723 = vmatmul.mubr.bf16.vlgmr.msra.gmra.mrb[4].mxu1 %v604_v62 }
 0x2a8   : > { %v724_v0 = vpop.f32.mrb[4].mxu1 }
 0x2a9   : > { %v730_v2 = vadd.f32 %v724_v0, %v553_v54  ;;  %v726_v3 = vpop.f32.mrb[5].mxu1 }
 0x2aa   : > { %v727_v4 = vpop.f32.mrb[6].mxu1 }
 0x2ab   : > { %v738_v5 = vadd.f32 %v886_v1, %v730_v2  ;;  %v728_v6 = vpop.f32.mrb[7].mxu1 }
 0x2ad   : > { %v739_v7 = vmax.f32 %v738_v5, 0.0 }
 0x2af   : > { %v740_v8 = vpack.c.bf16 %v739_v7, %v739_v7 }
 0x2b1   : > { %741 = vst [vmem:[%s195_s20] sm:$0x3] %v740_v8 }
 0x2b2 PF: > { %s14_s15 = sadd.s32 1, %s938_s15  }
 0x2b3   : > { %p11_p4 = scmp.ge.s32.totalorder %s14_s15, 4  }
 0x2b5   :  { %13 = sbr.rel (!%p11_p4) target bundleno = 1 (0x1), region = 70 }

// kernel: tile.38
= control target key start
LH: loop header
LB: loop body
LE: loop exit
PB: predicated region body
PF: predicated region fallthrough
CT: control target
= control target key end

     0   :  { %s22_s0 = inlined_call_operand.vmem [shape: f32[32], index: 0, kind: input, shape index: {}]   ;;  %s23_s1 = inlined_call_operand.vmem [shape: f32[8,32], index: 1, kind: output, shape index: {}]  }
   0x1   :  { %v4_v0 = vld [vmem:[%s22_s0] ss:$0 sm:$0xff] }
   0x2   :  { %5 = vst [vmem:[%s23_s1] sm:$0xff] %v4_v0 }

// kernel: tile.39
= control target key start
LH: loop header
LB: loop body
LE: loop exit
PB: predicated region body
PF: predicated region fallthrough
CT: control target
= control target key end

     0   :  { %s7_s6 = smov 3  ;;  %s14_s9 = smov 3  ;;  %vm4_vm0 = vcmask 261120   ;;  %vm11_vm1 = vcmask 1048320   ;;  %vm18_vm2 = vcmask 785920   ;;  %vm25_vm3 = vcmask 523520   ;;  %s76_s0 = inlined_call_operand.vmem [shape: f32[8,32], index: 0, kind: input, shape index: {}]   ;;  %s77_s1 = inlined_call_operand.vmem [shape: f32[1,256], index: 1, kind: output, shape index: {}]  }
   0x1   :  { %v38_v0 = vld [vmem:[%s76_s0 + $0x3] ss:$4 sm:%s7_s6]   ;;  %s45_s10 = smov 96   ;;  %s21_s11 = smov 3  ;;  %v39_v1 = vld [vmem:[%s76_s0 + $0x2] ss:$4 sm:%s14_s9]  }
   0x2   :  { %9 = vrot.lane.b32.xlu0 %v38_v0, %s45_s10  ;;  %v40_v2 = vld [vmem:[%s76_s0 + $0x1] ss:$4 sm:%s21_s11]   ;;  %s2_s16 = smov 3  ;;  %s46_s17 = smov 32  }
   0x3   :  { %23 = vrot.lane.b32.xlu1 %v40_v2, %s46_s17  ;;  %v3_v3 = vld [vmem:[%s76_s0] ss:$4 sm:%s2_s16]   ;;  %s47_s0 = smov 64  }
   0x4   :  { %5 = vst.msk [vmem:[#allocation0] ss:$8 sm:$0x3] %vm4_vm0, %v3_v3  }
   0x6   :  { %16 = vrot.lane.b32.xlu0 %v39_v1, %s47_s0 }
  0x74   :  { %v10_v4 = vpop.permute.xlu0 %9  }
  0x75   :  { %12 = vst.msk [vmem:[#allocation0] ss:$8 sm:$0x3] %vm11_vm1, %v10_v4   ;;  %v24_v5 = vpop.permute.xlu1 %23  }
  0x78   :  { %v17_v6 = vpop.permute.xlu0 %16  }
  0x79   :  { %19 = vst.msk [vmem:[#allocation0] ss:$8 sm:$0x3] %vm18_vm2, %v17_v6  }
  0x7a   :  { %26 = vst.msk [vmem:[#allocation0] ss:$8 sm:$0x3] %vm25_vm3, %v24_v5  }
  0x81   :  { %v30_v7 = vld [vmem:[#allocation0] sm:$0x1]  ;;  %v34_v8 = vld [vmem:[#allocation0 + $0x8] sm:$0x1] }
  0x82   :  { %32 = vst [vmem:[%s77_s1] sm:$0x1] %v30_v7  ;;  %41 = vst [vmem:[%s77_s1 + $0x1] sm:$0x1] %v34_v8 }

// kernel: model_forward.6
= control target key start
LH: loop header
LB: loop body
LE: loop exit
PB: predicated region body
PF: predicated region fallthrough
CT: control target
= control target key end

     0   :  { %s972_s21 = smov 0   ;;  %s1150_s0 = inlined_call_operand.vmem [shape: bf16[2,10,160], index: 0, kind: input, shape index: {}]   ;;  %s1151_s1 = inlined_call_operand.vmem [shape: bf16[2,4,128], index: 1, kind: input, shape index: {}]   ;;  %s1152_s2 = inlined_call_operand.vmem [shape: bf16[8,4], index: 2, kind: input, shape index: {}]   ;;  %s1153_s3 = inlined_call_operand.vmem [shape: bf16[160,256], index: 3, kind: input, shape index: {}]   ;;  %s1154_s4 = inlined_call_operand.vmem [shape: bf16[128,256], index: 4, kind: input, shape index: {}]   ;;  %s1155_s5 = inlined_call_operand.vmem [shape: f32[1,256], index: 5, kind: input, shape index: {}]   ;;  %s1156_s6 = inlined_call_operand.vmem [shape: bf16[2,10,320], index: 6, kind: output, shape index: {}]  }
   0x1 LB: > { %s793_s22 = sadd.s32 4294967295, %s931_s21   ;;  %p797_p0 = scmp.ge.s32.totalorder %s931_s21, 1  ;;  %s931_s21 = sphi %s972_s21, %s16_s21  }
   0x2   : > { %p221_p1 = scmp.lt.s32.totalorder %s931_s21, 3 }
   0x4   : > { %p222_p2 = pnand %p797_p0, %p221_p1 }
   0x5   : > { %p255_p3 = scmp.lt.s32.totalorder (!%p222_p2), %s793_s22, 1  ;;  %v933_v0 = vmov (!%p222_p2), 0.0   ;;  %vm934_vm0 = vmmov (!%p222_p2), 0   ;;  %v868_v1 = vld [vmem:[%s1153_s3 + $0x4] ss:$8 sps:$4 sm:$0xff] (!%p222_p2)   ;;  %vm298_vm1 = vcmask (!%p222_p2), 1041408   ;;  %v650_v60 = vlaneseq (!%p222_p2) }
   0x6   : > { %225 = sbr.rel (%p222_p2) target bundleno = 584 (0x248), region = 44  ;;  %849 = vmatprep.subr.bf16.mxu1 (!%p222_p2), %v933_v0  ;;  %851 = vmatprep.mubr.msk.bf16.mxu1 (!%p222_p2), %vm934_vm0, %v933_v0  ;;  %v870_v2 = vld [vmem:[%s1153_s3] ss:$8 sps:$4 sm:$0xff] (!%p222_p2)   ;;  %v871_v3 = vld [vmem:[%s1153_s3 + $0x14] ss:$8 sps:$4 sm:$0xff] (!%p222_p2)   ;;  %vm294_vm2 = vcmask (!%p222_p2), 31744  }
   0x7   : > { %607 = vmatprep.subr.bf16.mxu0 (!%p222_p2), %v868_v1  ;;  %v873_v4 = vld [vmem:[%s1153_s3 + $0x10] ss:$8 sps:$4 sm:$0xff] (!%p222_p2)   ;;  %v874_v5 = vld [vmem:[%s1153_s3 + $0x24] ss:$8 sps:$4 sm:$0xff] (!%p222_p2)   ;;  %v292_v7 = vld [vmem:[%s1152_s2] sm:$0xf] (!%p222_p2) }
   0x8   : > { %608 = vmatpush1.bf16.msra.mxu0 (!%p222_p2), %v870_v2  ;;  %v879_v8 = vld [vmem:[%s1154_s4 + $0x4] ss:$8 sps:$4 sm:$0xff] (!%p222_p2)   ;;  %v876_v10 = vld [vmem:[%s1153_s3 + $0x20] ss:$8 sps:$4 sm:$0xff] (!%p222_p2)   ;;  %v880_v12 = vld [vmem:[%s1153_s3 + $0x34] ss:$8 sps:$4 sm:$0xff] (!%p222_p2)  }
   0x9   : > { %609 = vmatprep.subr.bf16.mxu0 (!%p222_p2), %v871_v3  ;;  %v877_v11 = vld [vmem:[%s1154_s4] ss:$8 sps:$4 sm:$0xff] (!%p222_p2)   ;;  %v885_v13 = vld [vmem:[%s1154_s4 + $0x14] ss:$8 sps:$4 sm:$0xff] (!%p222_p2)   ;;  %v882_v14 = vld [vmem:[%s1153_s3 + $0x30] ss:$8 sps:$4 sm:$0xff] (!%p222_p2)  }
   0xa   : > { %v883_v15 = vld [vmem:[%s1154_s4 + $0x10] ss:$8 sps:$4 sm:$0xff] (!%p222_p2)   ;;  %v886_v16 = vld [vmem:[%s1153_s3 + $0x44] ss:$8 sps:$4 sm:$0xff] (!%p222_p2)   ;;  %v888_v18 = vld [vmem:[%s1153_s3 + $0x40] ss:$8 sps:$4 sm:$0xff] (!%p222_p2)  }
   0xb   : > { %v891_v17 = vld [vmem:[%s1154_s4 + $0x24] ss:$8 sps:$4 sm:$0xff] (!%p222_p2)   ;;  %v889_v19 = vld [vmem:[%s1154_s4 + $0x20] ss:$8 sps:$4 sm:$0xff] (!%p222_p2)   ;;  %v892_v20 = vld [vmem:[%s1153_s3 + $0x54] ss:$8 sps:$4 sm:$0xff] (!%p222_p2)  }
   0xc   : > { %610 = vmatpush1.bf16.msra.mxu0 (!%p222_p2), %v873_v4  ;;  %v897_v21 = vld [vmem:[%s1154_s4 + $0x34] ss:$8 sps:$4 sm:$0xff] (!%p222_p2)   ;;  %v894_v22 = vld [vmem:[%s1153_s3 + $0x50] ss:$8 sps:$4 sm:$0xff] (!%p222_p2)   ;;  %v898_v24 = vld [vmem:[%s1153_s3 + $0x64] ss:$8 sps:$4 sm:$0xff] (!%p222_p2)  }
   0xd   : > { %s1164_s22 = smov (!%p255_p3, %s793_s22), 1  ;;  %611 = vmatprep.subr.bf16.mxu0 %v874_v5  ;;  %v895_v23 = vld [vmem:[%s1154_s4 + $0x30] ss:$8 sps:$4 sm:$0xff]   ;;  %v903_v25 = vld [vmem:[%s1154_s4 + $0x44] ss:$8 sps:$4 sm:$0xff]   ;;  %vm603_vm3 = vcmask 261120  }
   0xe   : > { %s800_s29 = sshll.u32 %s1164_s22, 1  ;;  %s845_s27 = sshll.u32 %s1164_s22, 4  ;;  %v900_v26 = vld [vmem:[%s1153_s3 + $0x60] ss:$8 sps:$4 sm:$0xff]   ;;  %v904_v28 = vld [vmem:[%s1153_s3 + $0x74] ss:$8 sps:$4 sm:$0xff]  }
   0xf   : > { %s263_s10 = scalar_lea.vmem %s1151_s1, %s800_s29  ;;  %v901_v27 = vld [vmem:[%s1154_s4 + $0x40] ss:$8 sps:$4 sm:$0xff]   ;;  %s1065_s12 = scalar_lea.vmem %s1150_s0, %s845_s27  ;;  %v909_v29 = vld [vmem:[%s1154_s4 + $0x54] ss:$8 sps:$4 sm:$0xff]   ;;  %v906_v31 = vld [vmem:[%s1153_s3 + $0x70] ss:$8 sps:$4 sm:$0xff]  }
  0x10   : > { %v293_v6 = vld [vmem:[%s263_s10] sm:$0x3]  ;;  %612 = vmatpush1.bf16.msra.mxu0 %v876_v10  ;;  %v924_v30 = vld [vmem:[%s1065_s12 + $0x4] ss:$8 sps:$4 sm:$0x1f]   ;;  %s855_s16 = smul.u32 24, %s1164_s22 }
  0x11   : > { %v300_v9 = vsel %vm298_vm1, %v293_v6, 0  ;;  %613 = vmatprep.subr.bf16.mxu0 %v880_v12  ;;  %v907_v32 = vld [vmem:[%s1154_s4 + $0x50] ss:$8 sps:$4 sm:$0xff]   ;;  %v496_v33 = vshrl.u32 %v924_v30, 16  ;;  %v498_v34 = vshll.u32 %v924_v30, 16  ;;  %v935_v50 = vmov 0  }
  0x12   : > { %850 = vmatpush3.bf16.msra.mxu1 %v300_v9  ;;  %v910_v35 = vld [vmem:[%s1153_s3 + $0x84] ss:$8 sps:$4 sm:$0xff]   ;;  %v912_v38 = vld [vmem:[%s1153_s3 + $0x80] ss:$8 sps:$4 sm:$0xff]   ;;  %v916_v41 = vld [vmem:[%s1153_s3 + $0x94] ss:$8 sps:$4 sm:$0xff]   ;;  %s1110_s19 = scalar_lea.vmem %s1156_s6, %s855_s16 }
  0x13   : > { %439 = vmatprep.subr.bf16.mxu1 %v879_v8  ;;  %v915_v36 = vld [vmem:[%s1154_s4 + $0x64] ss:$8 sps:$4 sm:$0xff]   ;;  %v500_v37 = vrot.slane %v498_v34, 1  ;;  %v913_v39 = vld [vmem:[%s1154_s4 + $0x60] ss:$8 sps:$4 sm:$0xff]   ;;  %vm663_vm4 = vcmask 519168  }
  0x14   : > { %614 = vmatpush1.bf16.msra.mxu0 %v882_v14  ;;  %v921_v42 = vld [vmem:[%s1154_s4 + $0x74] ss:$8 sps:$4 sm:$0xff]   ;;  %v918_v43 = vld [vmem:[%s1153_s3 + $0x90] ss:$8 sps:$4 sm:$0xff]   ;;  %vm666_vm5 = vcmask 516096   ;;  %v651_v61 = vshrl.u32 %v650_v60, 7 }
  0x15   : > { %852 = vmatmul.mubr.msk.bf16.vlgmr.msra.gmra.mrb[0].mxu1 %vm294_vm2, %v292_v7  ;;  %615 = vmatprep.subr.bf16.mxu0 %v886_v16  ;;  %v501_v40 = vor.u32 %v500_v37, %v496_v33  ;;  %v919_v44 = vld [vmem:[%s1154_s4 + $0x70] ss:$8 sps:$4 sm:$0xff]   ;;  %v922_v45 = vld [vmem:[%s1065_s12] ss:$8 sps:$4 sm:$0x1f]   ;;  %s936_s20 = smov 32  }
  0x16   : > { %440 = vmatpush1.bf16.msra.mxu1 %v877_v11  ;;  %v491_v46 = vshll.u32 %v922_v45, 16  ;;  %v489_v47 = vshrl.u32 %v922_v45, 16  ;;  %471 = vmatprep.mubr.bf16.mxu1 %v935_v50  ;;  %665 = vst [vmem:[%s1110_s19 + $0xc] sm:$0x11] %v935_v50  ;;  %664 = vst.msk [vmem:[%s1110_s19 + $0x8] sm:$0xf] %vm663_vm4, %v935_v50 }
  0x17   : > { %441 = vmatprep.subr.bf16.mxu1 %v885_v13  ;;  %841 = vmatprep.mubr.msk.bf16.mxu0 %vm603_vm3, %v501_v40  ;;  %667 = vst.msk [vmem:[%s1110_s19 + $0x14] sm:$0x1] %vm666_vm5, %v935_v50  ;;  %v652_v62 = vsub.s32 0, %v651_v61  ;;  %v648_v63 = vld [vmem:[%s1155_s5] sm:$0x3]  ;;  %v656_v0 = vsub.s32 1, %v651_v61 }
  0x18   : > { %616 = vmatpush1.bf16.msra.mxu0 %v888_v18  ;;  %v493_v48 = vrot.slane %v491_v46, 1  ;;  %vm696_vm6 = vcmask 1043712   ;;  %vm697_vm7 = vsmask.f32 7938  ;;  %vm699_vm8 = vcmask 1047556  }
  0x19   : > { %617 = vmatprep.subr.bf16.mxu0 %v892_v20  ;;  %v653_v1 = vrot.slane %v648_v63, %v652_v62  ;;  %v657_v3 = vrot.slane %v648_v63, %v656_v0  ;;  %vm700_vm9 = vsmask.f32 7954  ;;  %vm1118_vm10 = vmand %vm696_vm6, %vm697_vm7  ;;  %vm706_vm12 = vcmask 257024  }
  0x1a   : > { %442 = vmatpush1.bf16.msra.mxu1 %v883_v15  ;;  %v494_v49 = vor.u32 %v493_v48, %v489_v47  ;;  %vm1122_vm11 = vmand %vm699_vm8, %vm700_vm9  ;;  %vm711_vm13 = vcmask 1040640   ;;  %vm712_vm14 = vsmask.f32 256  ;;  %vm714_vm0 = vcmask 1044484  }
  0x1b   : > { %443 = vmatprep.subr.bf16.mxu1 %v891_v17  ;;  %vm702_vm15 = vmor %vm1122_vm11, %vm1118_vm10  ;;  %vm715_vm1 = vsmask.f32 4352  ;;  %vm721_vm5 = vcmask 253952  }
  0x1c   : > { %618 = vmatpush1.bf16.msra.mxu0 %v894_v22  ;;  %vm707_vm2 = vmand %vm706_vm12, %vm697_vm7 }
  0x1d   : > { %619 = vmatprep.subr.bf16.mxu0 %v898_v24  ;;  %vm1132_vm4 = vmand %vm711_vm13, %vm712_vm14 }
  0x1e   : > { %444 = vmatpush1.bf16.msra.mxu1 %v889_v19  ;;  %v708_v19 = vld [vmem:[%s1110_s19 + $0x8] sm:$0xf]  ;;  %vm716_vm6 = vmand %vm714_vm0, %vm715_vm1 }
  0x1f   : > { %445 = vmatprep.subr.bf16.mxu1 %v897_v21  ;;  %vm722_vm7 = vmand %vm721_vm5, %vm712_vm14 }
  0x20   : > { %620 = vmatpush1.bf16.msra.mxu0 %v900_v26  ;;  %v723_v26 = vld [vmem:[%s1110_s19 + $0x14] sm:$0x1]  ;;  %vm717_vm8 = vmor %vm716_vm6, %vm1132_vm4 }
  0x21   : > { %621 = vmatprep.subr.bf16.mxu0 %v904_v28  ;;  %v718_v28 = vld [vmem:[%s1110_s19 + $0xc] sm:$0x11] }
  0x22   : > { %446 = vmatpush1.bf16.msra.mxu1 %v895_v23 }
  0x23   : > { %447 = vmatprep.subr.bf16.mxu1 %v903_v25 }
  0x24   : > { %622 = vmatpush1.bf16.msra.mxu0 %v906_v31 }
  0x25   : > { %623 = vmatprep.subr.bf16.mxu0 %v910_v35 }
  0x26   : > { %448 = vmatpush1.bf16.msra.mxu1 %v901_v27 }
  0x27   : > { %449 = vmatprep.subr.bf16.mxu1 %v909_v29 }
  0x28   : > { %624 = vmatpush1.bf16.msra.mxu0 %v912_v38 }
  0x29   : > { %625 = vmatprep.subr.bf16.mxu0 %v916_v41 }
  0x2a   : > { %450 = vmatpush1.bf16.msra.mxu1 %v907_v32 }
  0x2b   : > { %451 = vmatprep.subr.bf16.mxu1 %v915_v36 }
  0x2c   : > { %626 = vmatpush1.bf16.msra.mxu0 %v918_v43 }
  0x2e   : > { %452 = vmatpush1.bf16.msra.mxu1 %v913_v39 }
  0x2f   : > { %453 = vmatprep.subr.bf16.mxu1 %v921_v42  ;;  %640 = vmatmul.mubr.bf16.vlgmr.msra.gmra.mrb[0].mxu0 %v494_v49 }
  0x32   : > { %454 = vmatpush1.bf16.msra.mxu1 %v919_v44 }
  0xe8   : > { %v336_v51 = vpop.f32.mrb[0].mxu1 }
  0xe9   : > { %v342_v52 = vpack.c.bf16 %v336_v51, %v336_v51  ;;  %v853_v53 = vpop.f32.mrb[1].mxu1 }
  0xea   : > { %v339_v54 = vpop.f32.mrb[2].mxu1 }
  0xeb   : > { %v854_v55 = vpop.f32.mrb[3].mxu1  ;;  %472 = vmatmul.mubr.bf16.vlgmr.msra.gmra.mrb[4].mxu1 %v342_v52 }
 0x102   : > { %v641_v56 = vpop.f32.mrb[0].mxu0 }
 0x103   : > { %v643_v57 = vpop.f32.mrb[1].mxu0 }
 0x104   : > { %v645_v58 = vpop.f32.mrb[2].mxu0 }
 0x105   : > { %v646_v59 = vpop.f32.mrb[3].mxu0 }
 0x1be   : > { %v473_v2 = vpop.f32.mrb[4].mxu1 }
 0x1bf   : > { %v642_v4 = vadd.f32 %v641_v56, %v473_v2  ;;  %v475_v5 = vpop.f32.mrb[5].mxu1 }
 0x1c0   : > { %v644_v6 = vadd.f32 %v643_v57, %v475_v5  ;;  %v477_v7 = vpop.f32.mrb[6].mxu1 }
 0x1c1   : > { %v660_v8 = vadd.f32 %v653_v1, %v642_v4  ;;  %v478_v9 = vpop.f32.mrb[7].mxu1 }
 0x1c2   : > { %v661_v10 = vadd.f32 %v657_v3, %v644_v6 }
 0x1c4   : > { %v846_v11 = vpack.c.bf16 %v661_v10, %v660_v8 }
 0x1c6   : > { %v676_v12 = vshrl.u32 %v846_v11, 16  ;;  %v679_v14 = vshll.u32 %v846_v11, 16 }
 0x1c8   : > { %v678_v13 = vrot.slane %v676_v12, 7 }
 0x1ca   : > { %v681_v15 = vor.u32 %v679_v14, %v678_v13  ;;  %v682_v16 = vrot.slane %v678_v13, 4 }
 0x1cc   : > { %683 = vrot.lane.b32.xlu0 %v681_v15, %s936_s20 }
 0x1d0   : > { %685 = vrot.lane.b32.xlu0 %v682_v16, %s936_s20 }
 0x23e   : > { %v684_v20 = vpop.permute.xlu0 %683 }
 0x23f   : > { %v687_v21 = vrot.slane %v684_v20, 4 }
 0x241   : > { %v690_v23 = vsel %vm603_vm3, %v687_v21, %v684_v20  ;;  %v709_v24 = vsel %vm707_vm2, %v687_v21, %v708_v19 }
 0x242   : > { %v704_v25 = vsel %vm702_vm15, %v690_v23, 0  ;;  %710 = vst [vmem:[%s1110_s19 + $0x8] sm:$0xf] %v709_v24  ;;  %v686_v27 = vpop.permute.xlu0 %685 }
 0x243   : > { %705 = vst [vmem:[%s1110_s19] sm:$0xff] %v704_v25  ;;  %v688_v29 = vrot.slane %v686_v27, 4 }
 0x245   : > { %v691_v30 = vsel %vm603_vm3, %v688_v29, %v686_v27  ;;  %v724_v31 = vsel %vm722_vm7, %v688_v29, %v723_v26 }
 0x246   : > { %v719_v32 = vsel %vm717_vm8, %v691_v30, %v718_v28  ;;  %725 = vst [vmem:[%s1110_s19 + $0x14] sm:$0x1] %v724_v31 }
 0x247   : > { %720 = vst [vmem:[%s1110_s19 + $0xc] sm:$0x11] %v719_v32 }
 0x248 PF: > { %s16_s21 = sadd.s32 1, %s931_s21  }
 0x249   : > { %p13_p4 = scmp.ge.s32.totalorder %s16_s21, 4  }
 0x24b   :  { %15 = sbr.rel (!%p13_p4) target bundleno = 1 (0x1), region = 77 }

// kernel: model_forward.7
= control target key start
LH: loop header
LB: loop body
LE: loop exit
PB: predicated region body
PF: predicated region fallthrough
CT: control target
= control target key end

     0   :  { %s2025_s18 = smov 0   ;;  %s2501_s0 = inlined_call_operand.vmem [shape: bf16[2,10,320], index: 0, kind: input, shape index: {}]   ;;  %s2502_s1 = inlined_call_operand.vmem [shape: bf16[3,320,256], index: 1, kind: input, shape index: {}]   ;;  %s2503_s2 = inlined_call_operand.vmem [shape: f32[1,256], index: 2, kind: input, shape index: {}]   ;;  %s2504_s3 = inlined_call_operand.vmem [shape: bf16[256,128], index: 3, kind: input, shape index: {}]   ;;  %s2505_s4 = inlined_call_operand.vmem [shape: f32[1,128], index: 4, kind: input, shape index: {}]   ;;  %s2506_s5 = inlined_call_operand.vmem [shape: f32[2,8,128], index: 5, kind: output, shape index: {}]  }
   0x1 LB: > { %s1511_s19 = sadd.s32 4294967295, %s1992_s18   ;;  %p1515_p0 = scmp.ge.s32.totalorder %s1992_s18, 1  ;;  %s1992_s18 = sphi %s2025_s18, %s15_s18  }
   0x2   : > { %p187_p1 = scmp.lt.s32.totalorder %s1992_s18, 3 }
   0x4   : > { %p188_p2 = pnand %p1515_p0, %p187_p1 }
   0x5   : > { %v1781_v0 = vld [vmem:[%s2502_s1 + $0x144] ss:$8 sps:$4 sm:$0xff] (!%p188_p2)   ;;  %p214_p3 = scmp.lt.s32.totalorder (!%p188_p2), %s1511_s19, 1  ;;  %v1994_v2 = vmov (!%p188_p2), 0   ;;  %v1785_v3 = vld [vmem:[%s2502_s1 + $0x140] ss:$8 sps:$4 sm:$0xff] (!%p188_p2)  }
   0x6   : > { %191 = sbr.rel (%p188_p2) target bundleno = 593 (0x251), region = 40  ;;  %v1783_v1 = vld [vmem:[%s2502_s1 + $0x244] ss:$8 sps:$4 sm:$0xff] (!%p188_p2)   ;;  %622 = vmatprep.mubr.bf16.mxu1 (!%p188_p2), %v1994_v2  ;;  %549 = vmatprep.subr.bf16.mxu0 (!%p188_p2), %v1781_v0  ;;  %v1786_v4 = vld [vmem:[%s2502_s1 + $0x240] ss:$8 sps:$4 sm:$0xff] (!%p188_p2)   ;;  %vm545_vm0 = vcmask (!%p188_p2), 523264  }
   0x7   : > { %590 = vmatprep.subr.bf16.mxu1 (!%p188_p2), %v1783_v1  ;;  %v1787_v5 = vld [vmem:[%s2502_s1 + $0x154] ss:$8 sps:$4 sm:$0xff] (!%p188_p2)   ;;  %550 = vmatpush1.bf16.msra.mxu0 (!%p188_p2), %v1785_v3  ;;  %v1791_v7 = vld [vmem:[%s2502_s1 + $0x150] ss:$8 sps:$4 sm:$0xff] (!%p188_p2)   ;;  %v1793_v9 = vld [vmem:[%s2502_s1 + $0x164] ss:$8 sps:$4 sm:$0xff] (!%p188_p2)  }
   0x8   : > { %591 = vmatpush1.bf16.msra.mxu1 (!%p188_p2), %v1786_v4  ;;  %v1789_v6 = vld [vmem:[%s2502_s1 + $0x254] ss:$8 sps:$4 sm:$0xff] (!%p188_p2)   ;;  %551 = vmatprep.subr.bf16.mxu0 (!%p188_p2), %v1787_v5  ;;  %v1792_v8 = vld [vmem:[%s2502_s1 + $0x250] ss:$8 sps:$4 sm:$0xff] (!%p188_p2)   ;;  %v1795_v10 = vld [vmem:[%s2502_s1 + $0x264] ss:$8 sps:$4 sm:$0xff] (!%p188_p2)  }
   0x9   : > { %592 = vmatprep.subr.bf16.mxu1 (!%p188_p2), %v1789_v6  ;;  %v1797_v11 = vld [vmem:[%s2502_s1 + $0x160] ss:$8 sps:$4 sm:$0xff] (!%p188_p2)   ;;  %v1799_v13 = vld [vmem:[%s2502_s1 + $0x174] ss:$8 sps:$4 sm:$0xff] (!%p188_p2)   ;;  %v1803_v15 = vld [vmem:[%s2502_s1 + $0x170] ss:$8 sps:$4 sm:$0xff] (!%p188_p2)  }
   0xa   : > { %v1798_v12 = vld [vmem:[%s2502_s1 + $0x260] ss:$8 sps:$4 sm:$0xff] (!%p188_p2)   ;;  %v1801_v14 = vld [vmem:[%s2502_s1 + $0x274] ss:$8 sps:$4 sm:$0xff] (!%p188_p2)   ;;  %v1804_v16 = vld [vmem:[%s2502_s1 + $0x270] ss:$8 sps:$4 sm:$0xff] (!%p188_p2)  }
   0xb   : > { %552 = vmatpush1.bf16.msra.mxu0 (!%p188_p2), %v1791_v7  ;;  %v1805_v17 = vld [vmem:[%s2502_s1 + $0x184] ss:$8 sps:$4 sm:$0xff] (!%p188_p2)   ;;  %v1810_v22 = vld [vmem:[%s2502_s1 + $0x180] ss:$8 sps:$4 sm:$0xff] (!%p188_p2)   ;;  %v1812_v25 = vld [vmem:[%s2502_s1 + $0x194] ss:$8 sps:$4 sm:$0xff] (!%p188_p2)  }
   0xc   : > { %593 = vmatpush1.bf16.msra.mxu1 (!%p188_p2), %v1792_v8  ;;  %553 = vmatprep.subr.bf16.mxu0 (!%p188_p2), %v1793_v9  ;;  %v1809_v18 = vld [vmem:[%s2502_s1 + $0x4] ss:$8 sps:$4 sm:$0xff] (!%p188_p2)   ;;  %v1807_v27 = vld [vmem:[%s2502_s1] ss:$8 sps:$4 sm:$0xff] (!%p188_p2)   ;;  %v1816_v28 = vld [vmem:[%s2502_s1 + $0x14] ss:$8 sps:$4 sm:$0xff] (!%p188_p2)  }
   0xd   : > { %s2508_s19 = smov (!%p214_p3, %s1511_s19), 1  ;;  %594 = vmatprep.subr.bf16.mxu1 %v1795_v10  ;;  %v1817_v30 = vld [vmem:[%s2502_s1 + $0x190] ss:$8 sps:$4 sm:$0xff]   ;;  %v1818_v31 = vld [vmem:[%s2502_s1 + $0x1a4] ss:$8 sps:$4 sm:$0xff]  }
   0xe   : > { %s1771_s13 = smul.u32 24, %s2508_s19  ;;  %v1814_v32 = vld [vmem:[%s2502_s1 + $0x10] ss:$8 sps:$4 sm:$0xff]   ;;  %v1822_v33 = vld [vmem:[%s2502_s1 + $0x24] ss:$8 sps:$4 sm:$0xff]   ;;  %s1517_s29 = sshll.u32 %s2508_s19, 3 }
   0xf   : > { %554 = vmatpush1.bf16.msra.mxu0 %v1797_v11  ;;  %v1823_v34 = vld [vmem:[%s2502_s1 + $0x1a0] ss:$8 sps:$4 sm:$0xff]   ;;  %v1824_v35 = vld [vmem:[%s2502_s1 + $0x1b4] ss:$8 sps:$4 sm:$0xff]   ;;  %v1829_v38 = vld [vmem:[%s2502_s1 + $0x1b0] ss:$8 sps:$4 sm:$0xff]   ;;  %s222_s9 = scalar_lea.vmem %s2506_s5, %s1517_s29 }
  0x10   : > { %s2082_s28 = scalar_lea.vmem %s2501_s0, %s1771_s13  ;;  %595 = vmatpush1.bf16.msra.mxu1 %v1798_v12  ;;  %555 = vmatprep.subr.bf16.mxu0 %v1799_v13  ;;  %v1820_v36 = vld [vmem:[%s2502_s1 + $0x20] ss:$8 sps:$4 sm:$0xff]   ;;  %v1828_v37 = vld [vmem:[%s2502_s1 + $0x34] ss:$8 sps:$4 sm:$0xff]   ;;  %v1830_v39 = vld [vmem:[%s2502_s1 + $0x1c4] ss:$8 sps:$4 sm:$0xff]  }
  0x11   : > { %596 = vmatprep.subr.bf16.mxu1 %v1801_v14  ;;  %v2097_v19 = vld [vmem:[%s2082_s28 + $0x8] sm:$0xf]  ;;  %v2100_v20 = vld [vmem:[%s2082_s28 + $0x14] sm:$0x1]  ;;  %v1826_v40 = vld [vmem:[%s2502_s1 + $0x30] ss:$8 sps:$4 sm:$0xff]  }
  0x12   : > { %v1560_v21 = vcombine.low %v2097_v19, %v2100_v20  ;;  %v1834_v41 = vld [vmem:[%s2502_s1 + $0x44] ss:$8 sps:$4 sm:$0xff]   ;;  %v1835_v42 = vld [vmem:[%s2502_s1 + $0x1c0] ss:$8 sps:$4 sm:$0xff]   ;;  %v1836_v43 = vld [vmem:[%s2502_s1 + $0x1d4] ss:$8 sps:$4 sm:$0xff]  }
  0x13   : > { %556 = vmatpush1.bf16.msra.mxu0 %v1803_v15  ;;  %v1832_v44 = vld [vmem:[%s2502_s1 + $0x40] ss:$8 sps:$4 sm:$0xff]   ;;  %v1840_v45 = vld [vmem:[%s2502_s1 + $0x54] ss:$8 sps:$4 sm:$0xff]   ;;  %v1841_v46 = vld [vmem:[%s2502_s1 + $0x1d0] ss:$8 sps:$4 sm:$0xff]  }
  0x14   : > { %597 = vmatpush1.bf16.msra.mxu1 %v1804_v16  ;;  %v337_v23 = vshrl.u32 %v1560_v21, 16  ;;  %v339_v24 = vshll.u32 %v1560_v21, 16  ;;  %557 = vmatprep.subr.bf16.mxu0 %v1805_v17  ;;  %v1842_v47 = vld [vmem:[%s2502_s1 + $0x1e4] ss:$8 sps:$4 sm:$0xff]   ;;  %v1838_v48 = vld [vmem:[%s2502_s1 + $0x50] ss:$8 sps:$4 sm:$0xff]  }
  0x15   : > { %839 = vmatprep.subr.bf16.mxu1 %v1809_v18  ;;  %v1846_v49 = vld [vmem:[%s2502_s1 + $0x64] ss:$8 sps:$4 sm:$0xff]   ;;  %v1847_v50 = vld [vmem:[%s2502_s1 + $0x1e0] ss:$8 sps:$4 sm:$0xff]   ;;  %v1848_v51 = vld [vmem:[%s2502_s1 + $0x1f4] ss:$8 sps:$4 sm:$0xff]  }
  0x16   : > { %v341_v26 = vrot.slane %v339_v24, 1  ;;  %v1844_v52 = vld [vmem:[%s2502_s1 + $0x60] ss:$8 sps:$4 sm:$0xff]   ;;  %v1852_v53 = vld [vmem:[%s2502_s1 + $0x74] ss:$8 sps:$4 sm:$0xff]  }
  0x17   : > { %558 = vmatpush1.bf16.msra.mxu0 %v1810_v22  ;;  %v1853_v54 = vld [vmem:[%s2502_s1 + $0x1f0] ss:$8 sps:$4 sm:$0xff]   ;;  %v2193_v55 = vld [vmem:[%s2082_s28] sm:$0xff]  ;;  %v1860_v1 = vld [vmem:[%s2502_s1 + $0x214] ss:$8 sps:$4 sm:$0xff]  }
  0x18   : > { %v342_v29 = vor.u32 %v341_v26, %v337_v23  ;;  %559 = vmatprep.subr.bf16.mxu0 %v1812_v25  ;;  %v2196_v56 = vld [vmem:[%s2082_s28 + $0xc] sm:$0x11]  ;;  %v1603_v57 = vcombine.high %v2193_v55, %v2193_v55  ;;  %v1859_v0 = vld [vmem:[%s2502_s1 + $0x200] ss:$8 sps:$4 sm:$0xff]   ;;  %v1864_v7 = vld [vmem:[%s2502_s1 + $0x94] ss:$8 sps:$4 sm:$0xff]  }
  0x19   : > { %v1854_v58 = vld [vmem:[%s2502_s1 + $0x204] ss:$8 sps:$4 sm:$0xff]   ;;  %v1559_v59 = vcombine.high %v2193_v55, %v2196_v56  ;;  %v1850_v60 = vld [vmem:[%s2502_s1 + $0x70] ss:$8 sps:$4 sm:$0xff]   ;;  %v1856_v4 = vld [vmem:[%s2502_s1 + $0x80] ss:$8 sps:$4 sm:$0xff]   ;;  %v1558_v6 = vcombine.low %v2193_v55, %v2196_v56 }
  0x1a   : > { %1601 = vmatmul.mubr.msk.bf16.vlgmr.msra.gmra.mrb[0].mxu1 %vm545_vm0, %v342_v29  ;;  %v1858_v63 = vld [vmem:[%s2502_s1 + $0x84] ss:$8 sps:$4 sm:$0xff]   ;;  %v1865_v8 = vld [vmem:[%s2502_s1 + $0x210] ss:$8 sps:$4 sm:$0xff]   ;;  %v1871_v13 = vld [vmem:[%s2502_s1 + $0x220] ss:$8 sps:$4 sm:$0xff]  }
  0x1b   : > { %840 = vmatpush1.bf16.msra.mxu1 %v1807_v27  ;;  %560 = vmatpush1.bf16.msra.mxu0 %v1817_v30  ;;  %v330_v61 = vshrl.u32 %v1559_v59, 16  ;;  %v332_v62 = vshll.u32 %v1559_v59, 16  ;;  %v1866_v9 = vld [vmem:[%s2502_s1 + $0x224] ss:$8 sps:$4 sm:$0xff]   ;;  %v1862_v10 = vld [vmem:[%s2502_s1 + $0x90] ss:$8 sps:$4 sm:$0xff]  }
  0x1c   : > { %841 = vmatprep.subr.bf16.mxu1 %v1816_v28  ;;  %561 = vmatprep.subr.bf16.mxu0 %v1818_v31  ;;  %v325_v11 = vshll.u32 %v1558_v6, 16  ;;  %v1870_v12 = vld [vmem:[%s2502_s1 + $0xa4] ss:$8 sps:$4 sm:$0xff]   ;;  %v1872_v14 = vld [vmem:[%s2502_s1 + $0x234] ss:$8 sps:$4 sm:$0xff]   ;;  %v323_v16 = vshrl.u32 %v1558_v6, 16 }
  0x1d   : > { %871 = vmatprep.mubr.bf16.mxu1 %v1603_v57  ;;  %v334_v3 = vrot.slane %v332_v62, 1  ;;  %v1868_v15 = vld [vmem:[%s2502_s1 + $0xa0] ss:$8 sps:$4 sm:$0xff]   ;;  %v1876_v18 = vld [vmem:[%s2502_s1 + $0xb4] ss:$8 sps:$4 sm:$0xff]  }
  0x1e   : > { %v327_v17 = vrot.slane %v325_v11, 1  ;;  %v1877_v21 = vld [vmem:[%s2502_s1 + $0x230] ss:$8 sps:$4 sm:$0xff]   ;;  %v1885_v22 = vld [vmem:[%s2502_s1 + $0x104] ss:$8 sps:$4 sm:$0xff]  }
  0x1f   : > { %842 = vmatpush1.bf16.msra.mxu1 %v1814_v32  ;;  %562 = vmatpush1.bf16.msra.mxu0 %v1823_v34  ;;  %v335_v5 = vor.u32 %v334_v3, %v330_v61  ;;  %v1874_v23 = vld [vmem:[%s2502_s1 + $0xb0] ss:$8 sps:$4 sm:$0xff]   ;;  %v1882_v25 = vld [vmem:[%s2502_s1 + $0xc4] ss:$8 sps:$4 sm:$0xff]   ;;  %v1883_v26 = vld [vmem:[%s2502_s1 + $0x100] ss:$8 sps:$4 sm:$0xff]  }
  0x20   : > { %843 = vmatprep.subr.bf16.mxu1 %v1822_v33  ;;  %563 = vmatprep.subr.bf16.mxu0 %v1824_v35  ;;  %v328_v24 = vor.u32 %v327_v17, %v323_v16  ;;  %v1891_v27 = vld [vmem:[%s2502_s1 + $0x114] ss:$8 sps:$4 sm:$0xff]   ;;  %v1880_v28 = vld [vmem:[%s2502_s1 + $0xc0] ss:$8 sps:$4 sm:$0xff]   ;;  %v1889_v30 = vld [vmem:[%s2502_s1 + $0x110] ss:$8 sps:$4 sm:$0xff]  }
  0x21   : > { %581 = vmatprep.mubr.bf16.mxu0 %v335_v5  ;;  %v1888_v29 = vld [vmem:[%s2502_s1 + $0xd4] ss:$8 sps:$4 sm:$0xff]   ;;  %v1897_v31 = vld [vmem:[%s2502_s1 + $0x124] ss:$8 sps:$4 sm:$0xff]   ;;  %v1886_v32 = vld [vmem:[%s2502_s1 + $0xd0] ss:$8 sps:$4 sm:$0xff]  }
  0x22   : > { %v1894_v33 = vld [vmem:[%s2502_s1 + $0xe4] ss:$8 sps:$4 sm:$0xff]   ;;  %v1895_v34 = vld [vmem:[%s2502_s1 + $0x120] ss:$8 sps:$4 sm:$0xff]   ;;  %v1903_v35 = vld [vmem:[%s2502_s1 + $0x134] ss:$8 sps:$4 sm:$0xff]  }
  0x23   : > { %844 = vmatpush1.bf16.msra.mxu1 %v1820_v36  ;;  %564 = vmatpush1.bf16.msra.mxu0 %v1829_v38  ;;  %v1892_v36 = vld [vmem:[%s2502_s1 + $0xe0] ss:$8 sps:$4 sm:$0xff]   ;;  %v1901_v38 = vld [vmem:[%s2502_s1 + $0x130] ss:$8 sps:$4 sm:$0xff]   ;;  %v1927_v3 = vld [vmem:[%s2502_s1 + $0x2e4] ss:$8 sps:$4 sm:$0xff]  }
  0x24   : > { %845 = vmatprep.subr.bf16.mxu1 %v1828_v37  ;;  %565 = vmatprep.subr.bf16.mxu0 %v1830_v39  ;;  %v1900_v37 = vld [vmem:[%s2502_s1 + $0xf4] ss:$8 sps:$4 sm:$0xff]   ;;  %v1909_v39 = vld [vmem:[%s2502_s1 + $0x284] ss:$8 sps:$4 sm:$0xff]   ;;  %v1955_v57 = vld [vmem:[%s2502_s1 + $0x3a0] ss:$8 sps:$4 sm:$0xff]  }
  0x25   : > { %v1916_v59 = vld [vmem:[%s2502_s1 + $0x2b0] ss:$8 sps:$4 sm:$0xff]   ;;  %v1930_v5 = vld [vmem:[%s2502_s1 + $0x2f4] ss:$8 sps:$4 sm:$0xff]   ;;  %v1939_v11 = vld [vmem:[%s2502_s1 + $0x324] ss:$8 sps:$4 sm:$0xff]  }
  0x26   : > { %v1961_v62 = vld [vmem:[%s2502_s1 + $0x3b0] ss:$8 sps:$4 sm:$0xff]   ;;  %v1946_v16 = vld [vmem:[%s2502_s1 + $0x340] ss:$8 sps:$4 sm:$0xff]   ;;  %v1954_v17 = vld [vmem:[%s2502_s1 + $0x354] ss:$8 sps:$4 sm:$0xff]  }
  0x27   : > { %846 = vmatpush1.bf16.msra.mxu1 %v1826_v40  ;;  %566 = vmatpush1.bf16.msra.mxu0 %v1835_v42  ;;  %v1898_v40 = vld [vmem:[%s2502_s1 + $0xf0] ss:$8 sps:$4 sm:$0xff]   ;;  %v1907_v42 = vld [vmem:[%s2502_s1 + $0x280] ss:$8 sps:$4 sm:$0xff]  }
  0x28   : > { %847 = vmatprep.subr.bf16.mxu1 %v1834_v41  ;;  %567 = vmatprep.subr.bf16.mxu0 %v1836_v43  ;;  %v1604_v41 = vcombine.low %v2097_v19, %v2097_v19  ;;  %v1945_v43 = vld [vmem:[%s2502_s1 + $0x384] ss:$8 sps:$4 sm:$0xff]   ;;  %v1602_v19 = vcombine.low %v2193_v55, %v2193_v55  ;;  %v1918_v55 = vld [vmem:[%s2502_s1 + $0x2b4] ss:$8 sps:$4 sm:$0xff]   ;;  %v1928_v6 = vld [vmem:[%s2502_s1 + $0x2f0] ss:$8 sps:$4 sm:$0xff]  }
  0x2b   : > { %848 = vmatpush1.bf16.msra.mxu1 %v1832_v44  ;;  %568 = vmatpush1.bf16.msra.mxu0 %v1841_v46  ;;  %v1912_v44 = vld [vmem:[%s2502_s1 + $0x294] ss:$8 sps:$4 sm:$0xff]   ;;  %v1910_v46 = vld [vmem:[%s2502_s1 + $0x290] ss:$8 sps:$4 sm:$0xff]  }
  0x2c   : > { %849 = vmatprep.subr.bf16.mxu1 %v1840_v45  ;;  %569 = vmatprep.subr.bf16.mxu0 %v1842_v47  ;;  %v1943_v45 = vld [vmem:[%s2502_s1 + $0x380] ss:$8 sps:$4 sm:$0xff]   ;;  %v1951_v47 = vld [vmem:[%s2502_s1 + $0x394] ss:$8 sps:$4 sm:$0xff]  }
  0x2f   : > { %850 = vmatpush1.bf16.msra.mxu1 %v1838_v48  ;;  %570 = vmatpush1.bf16.msra.mxu0 %v1847_v50  ;;  %v2330_v48 = vld [vmem:[%s2082_s28] sm:$0xee] }
  0x30   : > { %851 = vmatprep.subr.bf16.mxu1 %v1846_v49  ;;  %571 = vmatprep.subr.bf16.mxu0 %v1848_v51  ;;  %v1915_v49 = vld [vmem:[%s2502_s1 + $0x2a4] ss:$8 sps:$4 sm:$0xff]   ;;  %v1687_v50 = vcombine.high %v2330_v48, %v2196_v56  ;;  %v1949_v51 = vld [vmem:[%s2502_s1 + $0x390] ss:$8 sps:$4 sm:$0xff]  }
  0x33   : > { %852 = vmatpush1.bf16.msra.mxu1 %v1844_v52  ;;  %572 = vmatpush1.bf16.msra.mxu0 %v1853_v54  ;;  %v973_v52 = vrot.slane %v1687_v50, 1  ;;  %v1957_v54 = vld [vmem:[%s2502_s1 + $0x3a4] ss:$8 sps:$4 sm:$0xff]  }
  0x34   : > { %853 = vmatprep.subr.bf16.mxu1 %v1852_v53  ;;  %573 = vmatprep.subr.bf16.mxu0 %v1854_v58  ;;  %v1913_v53 = vld [vmem:[%s2502_s1 + $0x2a0] ss:$8 sps:$4 sm:$0xff]  }
  0x35   : > { %v922_v58 = vld [vmem:[%s2082_s28 + $0x8] sm:$0xe] }
  0x36   : > { %v1688_v61 = vcombine.low %v922_v58, %v2100_v20  ;;  %v1922_v20 = vld [vmem:[%s2502_s1 + $0x2d0] ss:$8 sps:$4 sm:$0xff]  }
  0x37   : > { %854 = vmatpush1.bf16.msra.mxu1 %v1850_v60  ;;  %574 = vmatpush1.bf16.msra.mxu0 %v1859_v0  ;;  %v1963_v60 = vld [vmem:[%s2502_s1 + $0x3b4] ss:$8 sps:$4 sm:$0xff]  }
  0x38   : > { %855 = vmatprep.subr.bf16.mxu1 %v1858_v63  ;;  %575 = vmatprep.subr.bf16.mxu0 %v1860_v1  ;;  %v1919_v63 = vld [vmem:[%s2502_s1 + $0x2c0] ss:$8 sps:$4 sm:$0xff]   ;;  %v1924_v0 = vld [vmem:[%s2502_s1 + $0x2d4] ss:$8 sps:$4 sm:$0xff]   ;;  %v974_v1 = vrot.slane %v1688_v61, 1 }
  0x3b   : > { %856 = vmatpush1.bf16.msra.mxu1 %v1856_v4  ;;  %576 = vmatpush1.bf16.msra.mxu0 %v1865_v8  ;;  %v1925_v4 = vld [vmem:[%s2502_s1 + $0x2e0] ss:$8 sps:$4 sm:$0xff]  }
  0x3c   : > { %857 = vmatprep.subr.bf16.mxu1 %v1864_v7  ;;  %577 = vmatprep.subr.bf16.mxu0 %v1866_v9  ;;  %v1933_v7 = vld [vmem:[%s2502_s1 + $0x304] ss:$8 sps:$4 sm:$0xff]   ;;  %v1931_v8 = vld [vmem:[%s2502_s1 + $0x300] ss:$8 sps:$4 sm:$0xff]   ;;  %v1936_v9 = vld [vmem:[%s2502_s1 + $0x314] ss:$8 sps:$4 sm:$0xff]  }
  0x3f   : > { %858 = vmatpush1.bf16.msra.mxu1 %v1862_v10  ;;  %578 = vmatpush1.bf16.msra.mxu0 %v1871_v13  ;;  %v1934_v10 = vld [vmem:[%s2502_s1 + $0x310] ss:$8 sps:$4 sm:$0xff]   ;;  %v1942_v13 = vld [vmem:[%s2502_s1 + $0x334] ss:$8 sps:$4 sm:$0xff]  }
  0x40   : > { %859 = vmatprep.subr.bf16.mxu1 %v1870_v12  ;;  %579 = vmatprep.subr.bf16.mxu0 %v1872_v14  ;;  %v1937_v12 = vld [vmem:[%s2502_s1 + $0x320] ss:$8 sps:$4 sm:$0xff]   ;;  %v1940_v14 = vld [vmem:[%s2502_s1 + $0x330] ss:$8 sps:$4 sm:$0xff]  }
  0x43   : > { %860 = vmatpush1.bf16.msra.mxu1 %v1868_v15  ;;  %580 = vmatpush1.bf16.msra.mxu0 %v1877_v21  ;;  %v1948_v15 = vld [vmem:[%s2502_s1 + $0x344] ss:$8 sps:$4 sm:$0xff]  }
  0x44   : > { %861 = vmatprep.subr.bf16.mxu1 %v1876_v18  ;;  %880 = vmatprep.subr.bf16.mxu0 %v1885_v22  ;;  %v1952_v18 = vld [vmem:[%s2502_s1 + $0x350] ss:$8 sps:$4 sm:$0xff]   ;;  %v1960_v21 = vld [vmem:[%s2502_s1 + $0x364] ss:$8 sps:$4 sm:$0xff]   ;;  %v1958_v22 = vld [vmem:[%s2502_s1 + $0x360] ss:$8 sps:$4 sm:$0xff]  }
  0x46   : > { %582 = vmatmul.mubr.bf16.vlgmr.msra.gmra.mrb[0].mxu0 %v328_v24  ;;  %v1686_v24 = vcombine.low %v2330_v48, %v2196_v56  ;;  %v1972_v56 = vld [vmem:[%s2504_s3 + $0x48] sm:$0xff]  }
  0x47   : > { %862 = vmatpush1.bf16.msra.mxu1 %v1874_v23  ;;  %881 = vmatpush1.bf16.msra.mxu0 %v1883_v26  ;;  %v1966_v23 = vld [vmem:[%s2502_s1 + $0x374] ss:$8 sps:$4 sm:$0xff]  }
  0x48   : > { %863 = vmatprep.subr.bf16.mxu1 %v1882_v25  ;;  %882 = vmatprep.subr.bf16.mxu0 %v1891_v27  ;;  %v1964_v25 = vld [vmem:[%s2502_s1 + $0x370] ss:$8 sps:$4 sm:$0xff]   ;;  %v972_v26 = vrot.slane %v1686_v24, 1  ;;  %v1970_v27 = vld [vmem:[%s2504_s3 + $0x40] sm:$0xff]  }
  0x49   : > { %912 = vmatprep.mubr.bf16.mxu0 %v1994_v2 }
  0x4b   : > { %864 = vmatpush1.bf16.msra.mxu1 %v1880_v28  ;;  %883 = vmatpush1.bf16.msra.mxu0 %v1889_v30  ;;  %v1971_v28 = vld [vmem:[%s2504_s3] sm:$0xff]   ;;  %v1974_v30 = vld [vmem:[%s2504_s3 + $0x50] sm:$0xff]  }
  0x4c   : > { %865 = vmatprep.subr.bf16.mxu1 %v1888_v29  ;;  %884 = vmatprep.subr.bf16.mxu0 %v1897_v31  ;;  %v1973_v29 = vld [vmem:[%s2504_s3 + $0x8] sm:$0xff]   ;;  %v1975_v31 = vld [vmem:[%s2504_s3 + $0x10] sm:$0xff]  }
  0x4f   : > { %866 = vmatpush1.bf16.msra.mxu1 %v1886_v32  ;;  %885 = vmatpush1.bf16.msra.mxu0 %v1895_v34  ;;  %v1976_v32 = vld [vmem:[%s2504_s3 + $0x58] sm:$0xff]   ;;  %v1978_v34 = vld [vmem:[%s2504_s3 + $0x60] sm:$0xff]  }
  0x50   : > { %867 = vmatprep.subr.bf16.mxu1 %v1894_v33  ;;  %886 = vmatprep.subr.bf16.mxu0 %v1903_v35  ;;  %v1977_v33 = vld [vmem:[%s2504_s3 + $0x18] sm:$0xff]   ;;  %v1979_v35 = vld [vmem:[%s2504_s3 + $0x20] sm:$0xff]  }
  0x53   : > { %868 = vmatpush1.bf16.msra.mxu1 %v1892_v36  ;;  %887 = vmatpush1.bf16.msra.mxu0 %v1901_v38  ;;  %v1980_v36 = vld [vmem:[%s2504_s3 + $0x68] sm:$0xff]  }
  0x54   : > { %869 = vmatprep.subr.bf16.mxu1 %v1900_v37  ;;  %1180 = vmatprep.subr.bf16.mxu0 %v1909_v39  ;;  %v1981_v38 = vld [vmem:[%s2504_s3 + $0x28] sm:$0xff]  }
  0x56   : > { %1645 = vmatmul.mubr.msk.bf16.vlgmr.msra.gmra.mrb[4].mxu0 %vm545_vm0, %v1604_v41 }
  0x57   : > { %870 = vmatpush1.bf16.msra.mxu1 %v1898_v40  ;;  %1181 = vmatpush1.bf16.msra.mxu0 %v1907_v42  ;;  %v1982_v42 = vld [vmem:[%s2504_s3 + $0x70] sm:$0xff]  }
  0x58   : > { %1221 = vmatprep.subr.bf16.mxu1 %v1945_v43  ;;  %1182 = vmatprep.subr.bf16.mxu0 %v1912_v44  ;;  %v1983_v43 = vld [vmem:[%s2504_s3 + $0x30] sm:$0xff]   ;;  %v1984_v44 = vld [vmem:[%s2504_s3 + $0x78] sm:$0xff]  }
  0x59   : > { %1212 = vmatprep.mubr.bf16.mxu0 %v973_v52 }
  0x5a   : > { %872 = vmatmul.mubr.bf16.vlgmr.msra.gmra.mrb[4].mxu1 %v1602_v19 }
  0x5b   : > { %1222 = vmatpush1.bf16.msra.mxu1 %v1943_v45  ;;  %1253 = vmatprep.mubr.bf16.mxu1 %v1994_v2  ;;  %v1921_v2 = vld [vmem:[%s2502_s1 + $0x2c4] ss:$8 sps:$4 sm:$0xff]   ;;  %v1985_v45 = vld [vmem:[%s2504_s3 + $0x38] sm:$0xff]  }
  0x5c   : > { %1183 = vmatpush1.bf16.msra.mxu0 %v1910_v46  ;;  %1223 = vmatprep.subr.bf16.mxu1 %v1951_v47 }
  0x5d   : > { %1184 = vmatprep.subr.bf16.mxu0 %v1915_v49 }
  0x5f   : > { %1224 = vmatpush1.bf16.msra.mxu1 %v1949_v51 }
  0x60   : > { %1185 = vmatpush1.bf16.msra.mxu0 %v1913_v53  ;;  %1225 = vmatprep.subr.bf16.mxu1 %v1957_v54 }
  0x61   : > { %1186 = vmatprep.subr.bf16.mxu0 %v1918_v55 }
  0x63   : > { %1226 = vmatpush1.bf16.msra.mxu1 %v1955_v57 }
  0x64   : > { %1187 = vmatpush1.bf16.msra.mxu0 %v1916_v59  ;;  %1227 = vmatprep.subr.bf16.mxu1 %v1963_v60 }
  0x65   : > { %1188 = vmatprep.subr.bf16.mxu0 %v1921_v2 }
  0x67   : > { %1228 = vmatpush1.bf16.msra.mxu1 %v1961_v62 }
  0x68   : > { %1189 = vmatpush1.bf16.msra.mxu0 %v1919_v63  ;;  %1749 = vmatprep.subr.bf16.mxu1 %v1970_v27  ;;  %v1730_v27 = vld [vmem:[%s2505_s4] ss:$0 sm:$0xff] }
  0x69   : > { %1190 = vmatprep.subr.bf16.mxu0 %v1924_v0 }
  0x6a   : > { %1729 = vmatmul.mubr.msk.bf16.vlgmr.msra.gmra.mrb[8].mxu1 %vm545_vm0, %v974_v1 }
  0x6b   : > { %1750 = vmatpush3.bf16.msra.mxu1 %v1971_v28 }
  0x6c   : > { %1191 = vmatpush1.bf16.msra.mxu0 %v1922_v20  ;;  %1751 = vmatprep.subr.bf16.mxu1 %v1972_v56 }
  0x6d   : > { %1192 = vmatprep.subr.bf16.mxu0 %v1927_v3  ;;  %v1266_v3 = vlaneseq }
  0x6f   : > { %1752 = vmatpush3.bf16.msra.mxu1 %v1973_v29 }
  0x70   : > { %1193 = vmatpush1.bf16.msra.mxu0 %v1925_v4  ;;  %1753 = vmatprep.subr.bf16.mxu1 %v1974_v30  ;;  %v1267_v4 = vshrl.u32 %v1266_v3, 7 }
  0x71   : > { %1194 = vmatprep.subr.bf16.mxu0 %v1930_v5 }
  0x72   : > { %v1268_v5 = vsub.s32 0, %v1267_v4 }
  0x73   : > { %1754 = vmatpush3.bf16.msra.mxu1 %v1975_v31 }
  0x74   : > { %1195 = vmatpush1.bf16.msra.mxu0 %v1928_v6  ;;  %1755 = vmatprep.subr.bf16.mxu1 %v1976_v32  ;;  %v1264_v6 = vld [vmem:[%s2503_s2] sm:$0x3] }
  0x75   : > { %1196 = vmatprep.subr.bf16.mxu0 %v1933_v7  ;;  %v1272_v7 = vsub.s32 1, %v1267_v4 }
  0x77   : > { %1756 = vmatpush3.bf16.msra.mxu1 %v1977_v33 }
  0x78   : > { %1197 = vmatpush1.bf16.msra.mxu0 %v1931_v8  ;;  %1757 = vmatprep.subr.bf16.mxu1 %v1978_v34 }
  0x79   : > { %1198 = vmatprep.subr.bf16.mxu0 %v1936_v9 }
  0x7b   : > { %1758 = vmatpush3.bf16.msra.mxu1 %v1979_v35 }
  0x7c   : > { %1199 = vmatpush1.bf16.msra.mxu0 %v1934_v10  ;;  %1759 = vmatprep.subr.bf16.mxu1 %v1980_v36  ;;  %v1269_v10 = vrot.slane %v1264_v6, %v1268_v5 }
  0x7d   : > { %1200 = vmatprep.subr.bf16.mxu0 %v1939_v11 }
  0x7f   : > { %1760 = vmatpush3.bf16.msra.mxu1 %v1981_v38 }
  0x80   : > { %1201 = vmatpush1.bf16.msra.mxu0 %v1937_v12  ;;  %1761 = vmatprep.subr.bf16.mxu1 %v1982_v42 }
  0x81   : > { %1202 = vmatprep.subr.bf16.mxu0 %v1942_v13  ;;  %v1273_v13 = vrot.slane %v1264_v6, %v1272_v7 }
  0x83   : > { %1762 = vmatpush3.bf16.msra.mxu1 %v1983_v43 }
  0x84   : > { %1203 = vmatpush1.bf16.msra.mxu0 %v1940_v14  ;;  %1763 = vmatprep.subr.bf16.mxu1 %v1984_v44 }
  0x85   : > { %1204 = vmatprep.subr.bf16.mxu0 %v1948_v15 }
  0x87   : > { %1764 = vmatpush3.bf16.msra.mxu1 %v1985_v45 }
  0x88   : > { %1205 = vmatpush1.bf16.msra.mxu0 %v1946_v16 }
  0x89   : > { %1206 = vmatprep.subr.bf16.mxu0 %v1954_v17 }
  0x8c   : > { %1207 = vmatpush1.bf16.msra.mxu0 %v1952_v18 }
  0x8d   : > { %1208 = vmatprep.subr.bf16.mxu0 %v1960_v21 }
  0x90   : > { %1209 = vmatpush1.bf16.msra.mxu0 %v1958_v22 }
  0x91   : > { %1210 = vmatprep.subr.bf16.mxu0 %v1966_v23 }
  0x94   : > { %1211 = vmatpush1.bf16.msra.mxu0 %v1964_v25 }
  0x97   : > { %1213 = vmatmul.mubr.bf16.vlgmr.msra.gmra.mrb[8].mxu0 %v972_v26 }
  0xed   : > { %v624_v37 = vpop.f32.mrb[0].mxu1 }
  0xee   : > { %v626_v39 = vpop.f32.mrb[1].mxu1 }
  0xef   : > { %v628_v40 = vpop.f32.mrb[2].mxu1 }
  0xf0   : > { %v629_v41 = vpop.f32.mrb[3].mxu1 }
 0x119   : > { %v583_v19 = vpop.f32.mrb[0].mxu0 }
 0x11a   : > { %v625_v46 = vadd.f32 %v624_v37, %v583_v19  ;;  %v585_v47 = vpop.f32.mrb[1].mxu0 }
 0x11b   : > { %v627_v48 = vadd.f32 %v626_v39, %v585_v47  ;;  %v587_v49 = vpop.f32.mrb[2].mxu0 }
 0x11c   : > { %v588_v50 = vpop.f32.mrb[3].mxu0 }
 0x129   : > { %v914_v51 = vpop.f32.mrb[4].mxu0 }
 0x12a   : > { %v916_v52 = vpop.f32.mrb[5].mxu0 }
 0x12b   : > { %v918_v53 = vpop.f32.mrb[6].mxu0 }
 0x12c   : > { %v919_v55 = vpop.f32.mrb[7].mxu0 }
 0x12d   : > { %v873_v54 = vpop.f32.mrb[4].mxu1 }
 0x12e   : > { %v874_v57 = vadd.f32 %v873_v54, %v625_v46  ;;  %v875_v58 = vpop.f32.mrb[5].mxu1 }
 0x12f   : > { %v876_v59 = vadd.f32 %v875_v58, %v627_v48  ;;  %v877_v60 = vpop.f32.mrb[6].mxu1 }
 0x130   : > { %v915_v2 = vadd.f32 %v914_v51, %v874_v57  ;;  %v878_v61 = vpop.f32.mrb[7].mxu1 }
 0x131   : > { %v917_v62 = vadd.f32 %v916_v52, %v876_v59 }
 0x13d   : > { %v1255_v63 = vpop.f32.mrb[8].mxu1 }
 0x13e   : > { %v1257_v0 = vpop.f32.mrb[9].mxu1 }
 0x13f   : > { %v1259_v1 = vpop.f32.mrb[10].mxu1 }
 0x140   : > { %v1260_v20 = vpop.f32.mrb[11].mxu1 }
 0x16a   : > { %v1214_v8 = vpop.f32.mrb[8].mxu0 }
 0x16b   : > { %v1256_v9 = vadd.f32 %v1255_v63, %v1214_v8  ;;  %v1216_v11 = vpop.f32.mrb[9].mxu0 }
 0x16c   : > { %v1258_v12 = vadd.f32 %v1257_v0, %v1216_v11  ;;  %v1218_v14 = vpop.f32.mrb[10].mxu0 }
 0x16d   : > { %v1262_v15 = vadd.f32 %v1256_v9, %v915_v2  ;;  %v1219_v16 = vpop.f32.mrb[11].mxu0 }
 0x16e   : > { %v1263_v17 = vadd.f32 %v1258_v12, %v917_v62 }
 0x16f   : > { %v1276_v18 = vadd.f32 %v1269_v10, %v1262_v15 }
 0x170   : > { %v1277_v21 = vadd.f32 %v1273_v13, %v1263_v17 }
 0x171   : > { %v1278_v22 = vmax.f32 %v1276_v18, 0.0 }
 0x172   : > { %v1279_v23 = vmax.f32 %v1277_v21, 0.0 }
 0x173   : > { %v1280_v25 = vpack.c.bf16 %v1278_v22, %v1278_v22 }
 0x174   : > { %v1281_v24 = vpack.c.bf16 %v1279_v23, %v1279_v23 }
 0x176   : > { %1449 = vmatprep.mubr.bf16.mxu1 %v1281_v24 }
 0x177   : > { %1450 = vmatmul.mubr.bf16.vlgmr.msra.gmra.mrb[12].mxu1 %v1280_v25 }
 0x24a   : > { %v1765_v26 = vpop.f32.mrb[12].mxu1 }
 0x24b   : > { %v1766_v28 = vpop.f32.mrb[13].mxu1 }
 0x24c   : > { %v1767_v56 = vadd.f32 %v1766_v28, %v1765_v26  ;;  %v1768_v29 = vpop.f32.mrb[14].mxu1 }
 0x24d   : > { %v1769_v30 = vpop.f32.mrb[15].mxu1 }
 0x24e   : > { %v1452_v31 = vadd.f32 %v1767_v56, %v1730_v27 }
 0x250   : > { %1457 = vst [vmem:[%s222_s9] sm:$0xff] %v1452_v31 }
 0x251 PF: > { %s15_s18 = sadd.s32 1, %s1992_s18  }
 0x252   : > { %p12_p4 = scmp.ge.s32.totalorder %s15_s18, 4  }
 0x254   :  { %14 = sbr.rel (!%p12_p4) target bundleno = 1 (0x1), region = 72 }

</bundles_post_ra>
